<compile_context>
chip_gen: v7x
topology: tpu7x:2x2x1
jax: 0.10.0
libtpu: 0.0.40
codegen_flags: <defaults>
</compile_context>

<pallas_src>
import functools

import jax
import jax.numpy as jnp
from jax.experimental import pallas as pl
from jax.experimental.pallas import tpu as pltpu


def _physical_vmem_bytes():
    """Per-core VMEM capacity, with a conservative (v7x) fallback."""
    try:
        info = pltpu.get_tpu_info()
        v = getattr(info, "vmem_capacity_bytes", None)
        if v:
            return int(v)
    except Exception:
        pass
    return 64 * 1024 * 1024


def _dense_grid_kernel(lin_ref, msk_ref, grid_ref, out_ref, *, dims, tile_n,
                       channels):
    """Gather-and-blend trilinear sampling for one tile of query points.

    lin_ref:  SMEM (chunk,)          int32  clipped base voxel linear idx / pt
    msk_ref:  VMEM (tile_n, 64)      f32    corner-weight x one-hot(sublane)
    grid_ref: VMEM (v_pad/8, 8, C)          voxel-major feature grid
    out_ref:  VMEM (tile_n, C)              sampled features for this tile
    """
    D, H, W = dims
    HW = H * W
    # Linear offsets of the 8 trilinear corners, ordered k = d*4 + h*2 + w.
    offs = tuple((((k >> 2) & 1) * HW + ((k >> 1) & 1) * W + (k & 1))
                 for k in range(8))

    tile_start = pl.program_id(0) * tile_n
    row_sel = jax.lax.broadcasted_iota(jnp.int32, (8, 1), 0)  # sublane ids

    def group_body(q, carry):
        row0 = pl.multiple_of(q * 8, 8)
        m8 = msk_ref[pl.ds(row0, 8), :]                 # (8, 64) weights
        acc = jnp.zeros((8, channels), jnp.float32)
        for u in range(8):                              # 8 points / out group
            lin0 = lin_ref[tile_start + row0 + u]       # scalar SMEM load
            # 8 dynamic leading-dim fetches -> one (64, C) corner slab.
            slab = jnp.concatenate(
                [grid_ref[(lin0 + offs[k]) >> 3].astype(jnp.float32)
                 for k in range(8)], axis=0)
            # Keep only this point's mask row; the MXU does both the
            # within-group row selection and the channel blend.
            mu = jnp.where(row_sel == u, m8, 0.0)       # (8, 64)
            acc = acc + jnp.dot(mu, slab,
                                preferred_element_type=jnp.float32)
        out_ref[pl.ds(row0, 8), :] = acc.astype(out_ref.dtype)
        return carry

    jax.lax.fori_loop(0, tile_n // 8, group_body, 0)


def dense_grid_forward(xyz, grid, xyz_min, xyz_max, *, tile_n=2048,
                       chunk_points=65536):
    """Equivalent of DenseGrid.forward.

    xyz:  (..., 3) world coordinates.
    grid: (1, C, D, H, W) dense feature grid (PyTorch layout).
    """
    C = int(grid.shape[1])
    D, H, W = int(grid.shape[2]), int(grid.shape[3]), int(grid.shape[4])
    assert min(D, H, W) >= 2, "world_size must be >= 2 along every axis"
    assert tile_n % 8 == 0 and chunk_points % tile_n == 0
    V = D * H * W

    batch_shape = xyz.shape[:-1]
    pts = xyz.reshape(-1, 3).astype(jnp.float32)
    n = pts.shape[0]

    xyz_min = jnp.asarray(xyz_min, jnp.float32)
    xyz_max = jnp.asarray(xyz_max, jnp.float32)
    sizes_f = jnp.array([D, H, W], jnp.float32)
    sizes_i = jnp.array([D, H, W], jnp.int32)

    # align_corners=True unnormalization: idx = ratio * (size - 1).
    idx = (pts - xyz_min) / (xyz_max - xyz_min) * (sizes_f - 1.0)    # (n, 3)
    # Clamp so far out-of-volume points cannot overflow the int32 cast; any
    # idx outside [0, size-1] already gets zero weight (zeros padding).
    idx = jnp.clip(idx, -2.0, sizes_f + 1.0)
    i0 = jnp.floor(idx).astype(jnp.int32)
    frac = idx - jnp.floor(idx)

    # Per-axis corner weights with zeros-padding validity.
    c0, c1 = i0, i0 + 1
    w0 = jnp.where((c0 >= 0) & (c0 < sizes_i), 1.0 - frac, 0.0)
    w1 = jnp.where((c1 >= 0) & (c1 < sizes_i), frac, 0.0)

    # Clip the base corner so the 2x2x2 brick always lies inside the grid and
    # re-align the (already zero-padded) weights onto the two brick slots.
    b = jnp.clip(i0, 0, sizes_i - 2)
    sw0 = jnp.where(c0 == b, w0, 0.0) + jnp.where(c1 == b, w1, 0.0)
    sw1 = jnp.where(c0 == b + 1, w0, 0.0) + jnp.where(c1 == b + 1, w1, 0.0)

    strides = jnp.array([H * W, W, 1], jnp.int32)
    lin0 = jnp.sum(b * strides, axis=-1).astype(jnp.int32)           # (n,)

    # Per-corner trilinear weights, k = d*4 + h*2 + w  ->  (n, 8).
    wd = jnp.stack([sw0[:, 0], sw1[:, 0]], axis=-1)
    wh = jnp.stack([sw0[:, 1], sw1[:, 1]], axis=-1)
    ww = jnp.stack([sw0[:, 2], sw1[:, 2]], axis=-1)
    w8 = (wd[:, :, None, None] * wh[:, None, :, None]
          * ww[:, None, None, :]).reshape(n, 8)

    # Pre-fold each corner weight with its one-hot within-group row selector:
    # mask64[p, k*8 + s] = w8[p, k] * (s == (lin0[p] + offs[k]) & 7).
    offs = jnp.array([(((k >> 2) & 1) * H * W + ((k >> 1) & 1) * W + (k & 1))
                      for k in range(8)], jnp.int32)
    sub = (lin0[:, None] + offs[None, :]) & 7                         # (n, 8)
    mask64 = (w8[:, :, None]
              * jax.nn.one_hot(sub, 8, dtype=jnp.float32)).reshape(n, 64)

    # Grid (1, C, D, H, W) -> voxel-major (V, C), padded to a multiple of 8
    # rows, viewed as (V/8, 8, C) so corner row-groups are fetched with a
    # dynamic index on the leading (untiled) dim.  Keep the grid's own dtype
    # (f32 stays f32 — no per-slab widening on v5e; bf16 also works since
    # accumulation is f32 in-kernel).
    grid_flat = jnp.transpose(grid[0], (1, 2, 3, 0)).reshape(V, C)
    v_pad = pl.cdiv(V, 8) * 8
    grid_flat = jnp.pad(grid_flat, ((0, v_pad - V), (0, 0)))
    grid_g = grid_flat.reshape(v_pad // 8, 8, C)

    # VMEM budget (per TensorCore): grid block (assume double-buffered) +
    # double-buffered mask / out tiles + headroom, capped below physical VMEM.
    grid_bytes = v_pad * C * grid_g.dtype.itemsize
    tile_bytes = 2 * (tile_n * 64 * 4) + 2 * (tile_n * C * 4)
    need = 2 * grid_bytes + tile_bytes + (4 << 20)
    cap = int(_physical_vmem_bytes() * 0.85)
    # TODO(synk): replace this assert with HBM brick streaming for big grids.
    assert need <= cap, (
        f"DenseGrid feature grid ({grid_bytes / 2**20:.1f} MiB) does not fit "
        f"per-core VMEM budget ({cap / 2**20:.1f} MiB); streaming path not "
        "implemented yet.")
    vmem_limit = int(min(cap, max(need, 32 << 20)))

    n_pad = pl.cdiv(max(n, 1), tile_n) * tile_n
    lin0_p = jnp.pad(lin0, (0, n_pad - n))
    mask_p = jnp.pad(mask64, ((0, n_pad - n), (0, 0)))

    kernel = functools.partial(_dense_grid_kernel, dims=(D, H, W),
                               tile_n=tile_n, channels=C)

    # Chunk over points so the scalar-prefetch (SMEM) base-index array stays
    # bounded (~4 B/point per chunk) for arbitrarily large batches.
    outs = []
    for s in range(0, n_pad, chunk_points):
        m = min(chunk_points, n_pad - s)
        out_c = pl.pallas_call(
            kernel,
            out_shape=jax.ShapeDtypeStruct((m, C), jnp.float32),
            grid_spec=pltpu.PrefetchScalarGridSpec(
                num_scalar_prefetch=1,
                grid=(m // tile_n,),
                in_specs=[
                    pl.BlockSpec((tile_n, 64), lambda i, lin: (i, 0)),
                    pl.BlockSpec((v_pad // 8, 8, C),
                                 lambda i, lin: (0, 0, 0)),   # whole grid
                ],
                out_specs=pl.BlockSpec((tile_n, C), lambda i, lin: (i, 0)),
            ),
            compiler_params=pltpu.CompilerParams(
                dimension_semantics=("parallel",),
                vmem_limit_bytes=vmem_limit),
        )(lin0_p[s:s + m], mask_p[s:s + m], grid_g)
        outs.append(out_c)
    out = outs[0] if len(outs) == 1 else jnp.concatenate(outs, axis=0)

    out = out[:n].reshape(*batch_shape, C)
    if C == 1:
        out = out[..., 0]
    return out


def dense_grid_forward_ref(xyz, grid, xyz_min, xyz_max):
    """Pure-JAX reference (same math as F.grid_sample trilinear/align_corners)."""
    C = grid.shape[1]
    D, H, W = int(grid.shape[2]), int(grid.shape[3]), int(grid.shape[4])
    sizes_f = jnp.array([D, H, W], jnp.float32)
    sizes_i = jnp.array([D, H, W], jnp.int32)
    strides = jnp.array([H * W, W, 1], jnp.int32)

    pts = xyz.reshape(-1, 3).astype(jnp.float32)
    xyz_min = jnp.asarray(xyz_min, jnp.float32)
    xyz_max = jnp.asarray(xyz_max, jnp.float32)
    idx = (pts - xyz_min) / (xyz_max - xyz_min) * (sizes_f - 1.0)
    i0 = jnp.floor(idx).astype(jnp.int32)
    frac = idx - jnp.floor(idx)

    grid_flat = jnp.transpose(grid[0], (1, 2, 3, 0)).reshape(D * H * W, C)
    out = jnp.zeros((pts.shape[0], C), jnp.float32)
    for dd in (0, 1):
        for hh in (0, 1):
            for ww in (0, 1):
                offs = jnp.array([dd, hh, ww], jnp.int32)
                corner = i0 + offs
                w = jnp.prod(jnp.where(offs.astype(bool), frac, 1.0 - frac),
                             axis=-1)
                valid = jnp.all((corner >= 0) & (corner < sizes_i), axis=-1)
                lin = jnp.sum(jnp.clip(corner, 0, sizes_i - 1) * strides,
                              axis=-1)
                out = out + jnp.where(valid, w, 0.0)[:, None] * grid_flat[lin]
    out = out.reshape(*xyz.shape[:-1], C)
    if C == 1:
        out = out[..., 0]
    return out


# TODO(synk): total_variation_add_grad (custom CUDA TV-grad op) and
# scale_volume_grid (trilinear resize) are training/maintenance utilities, not
# part of forward(); not implemented here.

if __name__ == "__main__":
    key = jax.random.PRNGKey(0)
    channels = 4
    world_size = (4, 8, 16)          # grid param shape: [1, C, 4, 8, 16]
    xyz_min = jnp.array([-1.0, -1.0, -1.0], jnp.float32)
    xyz_max = jnp.array([1.0, 1.0, 1.0], jnp.float32)

    k_grid, k_xyz = jax.random.split(key)
    # nn.Parameter(torch.zeros(...)) would give a trivially-zero output, so we
    # deterministically fill it with random values for a meaningful test.
    grid = jax.random.normal(k_grid, (1, channels, *world_size), jnp.float32)
    # Query points, some intentionally outside [xyz_min, xyz_max] to exercise
    # the zeros padding mode.
    xyz = jax.random.uniform(k_xyz, (2, 50, 3), jnp.float32,
                             minval=-1.2, maxval=1.2)

    out = dense_grid_forward(xyz, grid, xyz_min, xyz_max)
    out = jax.block_until_ready(out)

    ref = dense_grid_forward_ref(xyz, grid, xyz_min, xyz_max)
    assert out.shape == (2, 50, channels), out.shape
    if not jnp.allclose(out, ref, rtol=1e-4, atol=1e-4):
        raise AssertionError("Pallas output does not match JAX reference")
    print("KERNEL_OK")
</pallas_src>

<mosaic_0001>
module attributes {stable_mosaic.version = 11 : i64} {
  func.func @_dense_grid_kernel(%arg0: i32, %arg1: memref<2048xi32, #tpu.memory_space<smem>>, %arg2: memref<2048x64xf32, #tpu.memory_space<vmem>>, %arg3: memref<64x8x4xf32, #tpu.memory_space<vmem>>, %arg4: memref<2048x4xf32, #tpu.memory_space<vmem>>) attributes {dimension_semantics = [#tpu.dimension_semantics<parallel>], iteration_bounds = array<i64: 1>, scalar_prefetch = 1 : i64, scratch_operands = 0 : i64, tpu.core_type = #tpu.core_type<tc>, window_params = [{transform_indices = @transform_0, window_bounds = array<i64: 2048, 64>}, {pipeline_mode = #tpu.pipeline_mode<synchronous>, transform_indices = @transform_1, window_bounds = array<i64: 64, 8, 4>}, {transform_indices = @transform_2, window_bounds = array<i64: 2048, 4>}]} {
    %c2048_i32 = arith.constant 2048 : i32
    %0 = arith.muli %arg0, %c2048_i32 : i32
    %1 = tpu.iota {dimensions = array<i32: 0>} : vector<8x1xi32>
    %c0_i32 = arith.constant 0 : i32
    %c256_i32 = arith.constant 256 : i32
    %2 = arith.addi %c0_i32, %c256_i32 : i32
    %c1_i32 = arith.constant 1 : i32
    scf.for %arg5 = %c0_i32 to %2 step %c1_i32  : i32 {
      %c8_i32 = arith.constant 8 : i32
      %3 = arith.muli %arg5, %c8_i32 : i32
      %4 = tpu.assume_multiple %3, 8 : i32
      %5 = arith.index_cast %4 : i32 to index
      %c0 = arith.constant 0 : index
      %6 = vector.load %arg2[%5, %c0] : memref<2048x64xf32, #tpu.memory_space<vmem>>, vector<8x64xf32>
      %cst = arith.constant 0.000000e+00 : f32
      %7 = vector.broadcast %cst : f32 to vector<8x4xf32>
      %8 = arith.addi %0, %4 : i32
      %c0_i32_1 = arith.constant 0 : i32
      %9 = arith.addi %8, %c0_i32_1 : i32
      %10 = arith.index_cast %9 : i32 to index
      %11 = memref.load %arg1[%10] : memref<2048xi32, #tpu.memory_space<smem>>
      %c0_i32_2 = arith.constant 0 : i32
      %12 = arith.addi %11, %c0_i32_2 : i32
      %c3_i32 = arith.constant 3 : i32
      %13 = arith.shrsi %12, %c3_i32 : i32
      %14 = arith.index_cast %13 : i32 to index
      %c0_3 = arith.constant 0 : index
      %c0_4 = arith.constant 0 : index
      %15 = vector.load %arg3[%14, %c0_3, %c0_4] : memref<64x8x4xf32, #tpu.memory_space<vmem>>, vector<1x8x4xf32>
      %16 = vector.shape_cast %15 : vector<1x8x4xf32> to vector<8x4xf32>
      %c1_i32_5 = arith.constant 1 : i32
      %17 = arith.addi %11, %c1_i32_5 : i32
      %c3_i32_6 = arith.constant 3 : i32
      %18 = arith.shrsi %17, %c3_i32_6 : i32
      %19 = arith.index_cast %18 : i32 to index
      %c0_7 = arith.constant 0 : index
      %c0_8 = arith.constant 0 : index
      %20 = vector.load %arg3[%19, %c0_7, %c0_8] : memref<64x8x4xf32, #tpu.memory_space<vmem>>, vector<1x8x4xf32>
      %21 = vector.shape_cast %20 : vector<1x8x4xf32> to vector<8x4xf32>
      %c16_i32 = arith.constant 16 : i32
      %22 = arith.addi %11, %c16_i32 : i32
      %c3_i32_9 = arith.constant 3 : i32
      %23 = arith.shrsi %22, %c3_i32_9 : i32
      %24 = arith.index_cast %23 : i32 to index
      %c0_10 = arith.constant 0 : index
      %c0_11 = arith.constant 0 : index
      %25 = vector.load %arg3[%24, %c0_10, %c0_11] : memref<64x8x4xf32, #tpu.memory_space<vmem>>, vector<1x8x4xf32>
      %26 = vector.shape_cast %25 : vector<1x8x4xf32> to vector<8x4xf32>
      %c17_i32 = arith.constant 17 : i32
      %27 = arith.addi %11, %c17_i32 : i32
      %c3_i32_12 = arith.constant 3 : i32
      %28 = arith.shrsi %27, %c3_i32_12 : i32
      %29 = arith.index_cast %28 : i32 to index
      %c0_13 = arith.constant 0 : index
      %c0_14 = arith.constant 0 : index
      %30 = vector.load %arg3[%29, %c0_13, %c0_14] : memref<64x8x4xf32, #tpu.memory_space<vmem>>, vector<1x8x4xf32>
      %31 = vector.shape_cast %30 : vector<1x8x4xf32> to vector<8x4xf32>
      %c128_i32 = arith.constant 128 : i32
      %32 = arith.addi %11, %c128_i32 : i32
      %c3_i32_15 = arith.constant 3 : i32
      %33 = arith.shrsi %32, %c3_i32_15 : i32
      %34 = arith.index_cast %33 : i32 to index
      %c0_16 = arith.constant 0 : index
      %c0_17 = arith.constant 0 : index
      %35 = vector.load %arg3[%34, %c0_16, %c0_17] : memref<64x8x4xf32, #tpu.memory_space<vmem>>, vector<1x8x4xf32>
      %36 = vector.shape_cast %35 : vector<1x8x4xf32> to vector<8x4xf32>
      %c129_i32 = arith.constant 129 : i32
      %37 = arith.addi %11, %c129_i32 : i32
      %c3_i32_18 = arith.constant 3 : i32
      %38 = arith.shrsi %37, %c3_i32_18 : i32
      %39 = arith.index_cast %38 : i32 to index
      %c0_19 = arith.constant 0 : index
      %c0_20 = arith.constant 0 : index
      %40 = vector.load %arg3[%39, %c0_19, %c0_20] : memref<64x8x4xf32, #tpu.memory_space<vmem>>, vector<1x8x4xf32>
      %41 = vector.shape_cast %40 : vector<1x8x4xf32> to vector<8x4xf32>
      %c144_i32 = arith.constant 144 : i32
      %42 = arith.addi %11, %c144_i32 : i32
      %c3_i32_21 = arith.constant 3 : i32
      %43 = arith.shrsi %42, %c3_i32_21 : i32
      %44 = arith.index_cast %43 : i32 to index
      %c0_22 = arith.constant 0 : index
      %c0_23 = arith.constant 0 : index
      %45 = vector.load %arg3[%44, %c0_22, %c0_23] : memref<64x8x4xf32, #tpu.memory_space<vmem>>, vector<1x8x4xf32>
      %46 = vector.shape_cast %45 : vector<1x8x4xf32> to vector<8x4xf32>
      %c145_i32 = arith.constant 145 : i32
      %47 = arith.addi %11, %c145_i32 : i32
      %c3_i32_24 = arith.constant 3 : i32
      %48 = arith.shrsi %47, %c3_i32_24 : i32
      %49 = arith.index_cast %48 : i32 to index
      %c0_25 = arith.constant 0 : index
      %c0_26 = arith.constant 0 : index
      %50 = vector.load %arg3[%49, %c0_25, %c0_26] : memref<64x8x4xf32, #tpu.memory_space<vmem>>, vector<1x8x4xf32>
      %51 = vector.shape_cast %50 : vector<1x8x4xf32> to vector<8x4xf32>
      %52 = tpu.concatenate %16, %21, %26, %31, %36, %41, %46, %51 in 0 : vector<8x4xf32>, vector<8x4xf32>, vector<8x4xf32>, vector<8x4xf32>, vector<8x4xf32>, vector<8x4xf32>, vector<8x4xf32>, vector<8x4xf32> -> vector<64x4xf32>
      %c0_i32_27 = arith.constant 0 : i32
      %53 = vector.broadcast %c0_i32_27 : i32 to vector<8x1xi32>
      %54 = arith.cmpi eq, %1, %53 : vector<8x1xi32>
      %cst_28 = arith.constant 0.000000e+00 : f32
      %55 = vector.shape_cast %54 : vector<8x1xi1> to vector<8x1xi1>
      %56 = vector.broadcast %55 : vector<8x1xi1> to vector<8x64xi1>
      %57 = vector.broadcast %cst_28 : f32 to vector<8x64xf32>
      %58 = arith.select %56, %6, %57 : vector<8x64xi1>, vector<8x64xf32>
      %cst_29 = arith.constant dense<0.000000e+00> : vector<8x4xf32>
      %59 = tpu.matmul %58, %52, %cst_29 {dimension_numbers = #tpu.dot_dimension_numbers<[1], [0], [0], [1], [0, 0, 1, 1], [], []>} : vector<8x64xf32>, vector<64x4xf32>, vector<8x4xf32> -> vector<8x4xf32>
      %60 = arith.addf %7, %59 : vector<8x4xf32>
      %61 = arith.addi %0, %4 : i32
      %c1_i32_30 = arith.constant 1 : i32
      %62 = arith.addi %61, %c1_i32_30 : i32
      %63 = arith.index_cast %62 : i32 to index
      %64 = memref.load %arg1[%63] : memref<2048xi32, #tpu.memory_space<smem>>
      %c0_i32_31 = arith.constant 0 : i32
      %65 = arith.addi %64, %c0_i32_31 : i32
      %c3_i32_32 = arith.constant 3 : i32
      %66 = arith.shrsi %65, %c3_i32_32 : i32
      %67 = arith.index_cast %66 : i32 to index
      %c0_33 = arith.constant 0 : index
      %c0_34 = arith.constant 0 : index
      %68 = vector.load %arg3[%67, %c0_33, %c0_34] : memref<64x8x4xf32, #tpu.memory_space<vmem>>, vector<1x8x4xf32>
      %69 = vector.shape_cast %68 : vector<1x8x4xf32> to vector<8x4xf32>
      %c1_i32_35 = arith.constant 1 : i32
      %70 = arith.addi %64, %c1_i32_35 : i32
      %c3_i32_36 = arith.constant 3 : i32
      %71 = arith.shrsi %70, %c3_i32_36 : i32
      %72 = arith.index_cast %71 : i32 to index
      %c0_37 = arith.constant 0 : index
      %c0_38 = arith.constant 0 : index
      %73 = vector.load %arg3[%72, %c0_37, %c0_38] : memref<64x8x4xf32, #tpu.memory_space<vmem>>, vector<1x8x4xf32>
      %74 = vector.shape_cast %73 : vector<1x8x4xf32> to vector<8x4xf32>
      %c16_i32_39 = arith.constant 16 : i32
      %75 = arith.addi %64, %c16_i32_39 : i32
      %c3_i32_40 = arith.constant 3 : i32
      %76 = arith.shrsi %75, %c3_i32_40 : i32
      %77 = arith.index_cast %76 : i32 to index
      %c0_41 = arith.constant 0 : index
      %c0_42 = arith.constant 0 : index
      %78 = vector.load %arg3[%77, %c0_41, %c0_42] : memref<64x8x4xf32, #tpu.memory_space<vmem>>, vector<1x8x4xf32>
      %79 = vector.shape_cast %78 : vector<1x8x4xf32> to vector<8x4xf32>
      %c17_i32_43 = arith.constant 17 : i32
      %80 = arith.addi %64, %c17_i32_43 : i32
      %c3_i32_44 = arith.constant 3 : i32
      %81 = arith.shrsi %80, %c3_i32_44 : i32
      %82 = arith.index_cast %81 : i32 to index
      %c0_45 = arith.constant 0 : index
      %c0_46 = arith.constant 0 : index
      %83 = vector.load %arg3[%82, %c0_45, %c0_46] : memref<64x8x4xf32, #tpu.memory_space<vmem>>, vector<1x8x4xf32>
      %84 = vector.shape_cast %83 : vector<1x8x4xf32> to vector<8x4xf32>
      %c128_i32_47 = arith.constant 128 : i32
      %85 = arith.addi %64, %c128_i32_47 : i32
      %c3_i32_48 = arith.constant 3 : i32
      %86 = arith.shrsi %85, %c3_i32_48 : i32
      %87 = arith.index_cast %86 : i32 to index
      %c0_49 = arith.constant 0 : index
      %c0_50 = arith.constant 0 : index
      %88 = vector.load %arg3[%87, %c0_49, %c0_50] : memref<64x8x4xf32, #tpu.memory_space<vmem>>, vector<1x8x4xf32>
      %89 = vector.shape_cast %88 : vector<1x8x4xf32> to vector<8x4xf32>
      %c129_i32_51 = arith.constant 129 : i32
      %90 = arith.addi %64, %c129_i32_51 : i32
      %c3_i32_52 = arith.constant 3 : i32
      %91 = arith.shrsi %90, %c3_i32_52 : i32
      %92 = arith.index_cast %91 : i32 to index
      %c0_53 = arith.constant 0 : index
      %c0_54 = arith.constant 0 : index
      %93 = vector.load %arg3[%92, %c0_53, %c0_54] : memref<64x8x4xf32, #tpu.memory_space<vmem>>, vector<1x8x4xf32>
      %94 = vector.shape_cast %93 : vector<1x8x4xf32> to vector<8x4xf32>
      %c144_i32_55 = arith.constant 144 : i32
      %95 = arith.addi %64, %c144_i32_55 : i32
      %c3_i32_56 = arith.constant 3 : i32
      %96 = arith.shrsi %95, %c3_i32_56 : i32
      %97 = arith.index_cast %96 : i32 to index
      %c0_57 = arith.constant 0 : index
      %c0_58 = arith.constant 0 : index
      %98 = vector.load %arg3[%97, %c0_57, %c0_58] : memref<64x8x4xf32, #tpu.memory_space<vmem>>, vector<1x8x4xf32>
      %99 = vector.shape_cast %98 : vector<1x8x4xf32> to vector<8x4xf32>
      %c145_i32_59 = arith.constant 145 : i32
      %100 = arith.addi %64, %c145_i32_59 : i32
      %c3_i32_60 = arith.constant 3 : i32
      %101 = arith.shrsi %100, %c3_i32_60 : i32
      %102 = arith.index_cast %101 : i32 to index
      %c0_61 = arith.constant 0 : index
      %c0_62 = arith.constant 0 : index
      %103 = vector.load %arg3[%102, %c0_61, %c0_62] : memref<64x8x4xf32, #tpu.memory_space<vmem>>, vector<1x8x4xf32>
      %104 = vector.shape_cast %103 : vector<1x8x4xf32> to vector<8x4xf32>
      %105 = tpu.concatenate %69, %74, %79, %84, %89, %94, %99, %104 in 0 : vector<8x4xf32>, vector<8x4xf32>, vector<8x4xf32>, vector<8x4xf32>, vector<8x4xf32>, vector<8x4xf32>, vector<8x4xf32>, vector<8x4xf32> -> vector<64x4xf32>
      %c1_i32_63 = arith.constant 1 : i32
      %106 = vector.broadcast %c1_i32_63 : i32 to vector<8x1xi32>
      %107 = arith.cmpi eq, %1, %106 : vector<8x1xi32>
      %cst_64 = arith.constant 0.000000e+00 : f32
      %108 = vector.shape_cast %107 : vector<8x1xi1> to vector<8x1xi1>
      %109 = vector.broadcast %108 : vector<8x1xi1> to vector<8x64xi1>
      %110 = vector.broadcast %cst_64 : f32 to vector<8x64xf32>
      %111 = arith.select %109, %6, %110 : vector<8x64xi1>, vector<8x64xf32>
      %cst_65 = arith.constant dense<0.000000e+00> : vector<8x4xf32>
      %112 = tpu.matmul %111, %105, %cst_65 {dimension_numbers = #tpu.dot_dimension_numbers<[1], [0], [0], [1], [0, 0, 1, 1], [], []>} : vector<8x64xf32>, vector<64x4xf32>, vector<8x4xf32> -> vector<8x4xf32>
      %113 = arith.addf %60, %112 : vector<8x4xf32>
      %114 = arith.addi %0, %4 : i32
      %c2_i32 = arith.constant 2 : i32
      %115 = arith.addi %114, %c2_i32 : i32
      %116 = arith.index_cast %115 : i32 to index
      %117 = memref.load %arg1[%116] : memref<2048xi32, #tpu.memory_space<smem>>
      %c0_i32_66 = arith.constant 0 : i32
      %118 = arith.addi %117, %c0_i32_66 : i32
      %c3_i32_67 = arith.constant 3 : i32
      %119 = arith.shrsi %118, %c3_i32_67 : i32
      %120 = arith.index_cast %119 : i32 to index
      %c0_68 = arith.constant 0 : index
      %c0_69 = arith.constant 0 : index
      %121 = vector.load %arg3[%120, %c0_68, %c0_69] : memref<64x8x4xf32, #tpu.memory_space<vmem>>, vector<1x8x4xf32>
      %122 = vector.shape_cast %121 : vector<1x8x4xf32> to vector<8x4xf32>
      %c1_i32_70 = arith.constant 1 : i32
      %123 = arith.addi %117, %c1_i32_70 : i32
      %c3_i32_71 = arith.constant 3 : i32
      %124 = arith.shrsi %123, %c3_i32_71 : i32
      %125 = arith.index_cast %124 : i32 to index
      %c0_72 = arith.constant 0 : index
      %c0_73 = arith.constant 0 : index
      %126 = vector.load %arg3[%125, %c0_72, %c0_73] : memref<64x8x4xf32, #tpu.memory_space<vmem>>, vector<1x8x4xf32>
      %127 = vector.shape_cast %126 : vector<1x8x4xf32> to vector<8x4xf32>
      %c16_i32_74 = arith.constant 16 : i32
      %128 = arith.addi %117, %c16_i32_74 : i32
      %c3_i32_75 = arith.constant 3 : i32
      %129 = arith.shrsi %128, %c3_i32_75 : i32
      %130 = arith.index_cast %129 : i32 to index
      %c0_76 = arith.constant 0 : index
      %c0_77 = arith.constant 0 : index
      %131 = vector.load %arg3[%130, %c0_76, %c0_77] : memref<64x8x4xf32, #tpu.memory_space<vmem>>, vector<1x8x4xf32>
      %132 = vector.shape_cast %131 : vector<1x8x4xf32> to vector<8x4xf32>
      %c17_i32_78 = arith.constant 17 : i32
      %133 = arith.addi %117, %c17_i32_78 : i32
      %c3_i32_79 = arith.constant 3 : i32
      %134 = arith.shrsi %133, %c3_i32_79 : i32
      %135 = arith.index_cast %134 : i32 to index
      %c0_80 = arith.constant 0 : index
      %c0_81 = arith.constant 0 : index
      %136 = vector.load %arg3[%135, %c0_80, %c0_81] : memref<64x8x4xf32, #tpu.memory_space<vmem>>, vector<1x8x4xf32>
      %137 = vector.shape_cast %136 : vector<1x8x4xf32> to vector<8x4xf32>
      %c128_i32_82 = arith.constant 128 : i32
      %138 = arith.addi %117, %c128_i32_82 : i32
      %c3_i32_83 = arith.constant 3 : i32
      %139 = arith.shrsi %138, %c3_i32_83 : i32
      %140 = arith.index_cast %139 : i32 to index
      %c0_84 = arith.constant 0 : index
      %c0_85 = arith.constant 0 : index
      %141 = vector.load %arg3[%140, %c0_84, %c0_85] : memref<64x8x4xf32, #tpu.memory_space<vmem>>, vector<1x8x4xf32>
      %142 = vector.shape_cast %141 : vector<1x8x4xf32> to vector<8x4xf32>
      %c129_i32_86 = arith.constant 129 : i32
      %143 = arith.addi %117, %c129_i32_86 : i32
      %c3_i32_87 = arith.constant 3 : i32
      %144 = arith.shrsi %143, %c3_i32_87 : i32
      %145 = arith.index_cast %144 : i32 to index
      %c0_88 = arith.constant 0 : index
      %c0_89 = arith.constant 0 : index
      %146 = vector.load %arg3[%145, %c0_88, %c0_89] : memref<64x8x4xf32, #tpu.memory_space<vmem>>, vector<1x8x4xf32>
      %147 = vector.shape_cast %146 : vector<1x8x4xf32> to vector<8x4xf32>
      %c144_i32_90 = arith.constant 144 : i32
      %148 = arith.addi %117, %c144_i32_90 : i32
      %c3_i32_91 = arith.constant 3 : i32
      %149 = arith.shrsi %148, %c3_i32_91 : i32
      %150 = arith.index_cast %149 : i32 to index
      %c0_92 = arith.constant 0 : index
      %c0_93 = arith.constant 0 : index
      %151 = vector.load %arg3[%150, %c0_92, %c0_93] : memref<64x8x4xf32, #tpu.memory_space<vmem>>, vector<1x8x4xf32>
      %152 = vector.shape_cast %151 : vector<1x8x4xf32> to vector<8x4xf32>
      %c145_i32_94 = arith.constant 145 : i32
      %153 = arith.addi %117, %c145_i32_94 : i32
      %c3_i32_95 = arith.constant 3 : i32
      %154 = arith.shrsi %153, %c3_i32_95 : i32
      %155 = arith.index_cast %154 : i32 to index
      %c0_96 = arith.constant 0 : index
      %c0_97 = arith.constant 0 : index
      %156 = vector.load %arg3[%155, %c0_96, %c0_97] : memref<64x8x4xf32, #tpu.memory_space<vmem>>, vector<1x8x4xf32>
      %157 = vector.shape_cast %156 : vector<1x8x4xf32> to vector<8x4xf32>
      %158 = tpu.concatenate %122, %127, %132, %137, %142, %147, %152, %157 in 0 : vector<8x4xf32>, vector<8x4xf32>, vector<8x4xf32>, vector<8x4xf32>, vector<8x4xf32>, vector<8x4xf32>, vector<8x4xf32>, vector<8x4xf32> -> vector<64x4xf32>
      %c2_i32_98 = arith.constant 2 : i32
      %159 = vector.broadcast %c2_i32_98 : i32 to vector<8x1xi32>
      %160 = arith.cmpi eq, %1, %159 : vector<8x1xi32>
      %cst_99 = arith.constant 0.000000e+00 : f32
      %161 = vector.shape_cast %160 : vector<8x1xi1> to vector<8x1xi1>
      %162 = vector.broadcast %161 : vector<8x1xi1> to vector<8x64xi1>
      %163 = vector.broadcast %cst_99 : f32 to vector<8x64xf32>
      %164 = arith.select %162, %6, %163 : vector<8x64xi1>, vector<8x64xf32>
      %cst_100 = arith.constant dense<0.000000e+00> : vector<8x4xf32>
      %165 = tpu.matmul %164, %158, %cst_100 {dimension_numbers = #tpu.dot_dimension_numbers<[1], [0], [0], [1], [0, 0, 1, 1], [], []>} : vector<8x64xf32>, vector<64x4xf32>, vector<8x4xf32> -> vector<8x4xf32>
      %166 = arith.addf %113, %165 : vector<8x4xf32>
      %167 = arith.addi %0, %4 : i32
      %c3_i32_101 = arith.constant 3 : i32
      %168 = arith.addi %167, %c3_i32_101 : i32
      %169 = arith.index_cast %168 : i32 to index
      %170 = memref.load %arg1[%169] : memref<2048xi32, #tpu.memory_space<smem>>
      %c0_i32_102 = arith.constant 0 : i32
      %171 = arith.addi %170, %c0_i32_102 : i32
      %c3_i32_103 = arith.constant 3 : i32
      %172 = arith.shrsi %171, %c3_i32_103 : i32
      %173 = arith.index_cast %172 : i32 to index
      %c0_104 = arith.constant 0 : index
      %c0_105 = arith.constant 0 : index
      %174 = vector.load %arg3[%173, %c0_104, %c0_105] : memref<64x8x4xf32, #tpu.memory_space<vmem>>, vector<1x8x4xf32>
      %175 = vector.shape_cast %174 : vector<1x8x4xf32> to vector<8x4xf32>
      %c1_i32_106 = arith.constant 1 : i32
      %176 = arith.addi %170, %c1_i32_106 : i32
      %c3_i32_107 = arith.constant 3 : i32
      %177 = arith.shrsi %176, %c3_i32_107 : i32
      %178 = arith.index_cast %177 : i32 to index
      %c0_108 = arith.constant 0 : index
      %c0_109 = arith.constant 0 : index
      %179 = vector.load %arg3[%178, %c0_108, %c0_109] : memref<64x8x4xf32, #tpu.memory_space<vmem>>, vector<1x8x4xf32>
      %180 = vector.shape_cast %179 : vector<1x8x4xf32> to vector<8x4xf32>
      %c16_i32_110 = arith.constant 16 : i32
      %181 = arith.addi %170, %c16_i32_110 : i32
      %c3_i32_111 = arith.constant 3 : i32
      %182 = arith.shrsi %181, %c3_i32_111 : i32
      %183 = arith.index_cast %182 : i32 to index
      %c0_112 = arith.constant 0 : index
      %c0_113 = arith.constant 0 : index
      %184 = vector.load %arg3[%183, %c0_112, %c0_113] : memref<64x8x4xf32, #tpu.memory_space<vmem>>, vector<1x8x4xf32>
      %185 = vector.shape_cast %184 : vector<1x8x4xf32> to vector<8x4xf32>
      %c17_i32_114 = arith.constant 17 : i32
      %186 = arith.addi %170, %c17_i32_114 : i32
      %c3_i32_115 = arith.constant 3 : i32
      %187 = arith.shrsi %186, %c3_i32_115 : i32
      %188 = arith.index_cast %187 : i32 to index
      %c0_116 = arith.constant 0 : index
      %c0_117 = arith.constant 0 : index
      %189 = vector.load %arg3[%188, %c0_116, %c0_117] : memref<64x8x4xf32, #tpu.memory_space<vmem>>, vector<1x8x4xf32>
      %190 = vector.shape_cast %189 : vector<1x8x4xf32> to vector<8x4xf32>
      %c128_i32_118 = arith.constant 128 : i32
      %191 = arith.addi %170, %c128_i32_118 : i32
      %c3_i32_119 = arith.constant 3 : i32
      %192 = arith.shrsi %191, %c3_i32_119 : i32
      %193 = arith.index_cast %192 : i32 to index
      %c0_120 = arith.constant 0 : index
      %c0_121 = arith.constant 0 : index
      %194 = vector.load %arg3[%193, %c0_120, %c0_121] : memref<64x8x4xf32, #tpu.memory_space<vmem>>, vector<1x8x4xf32>
      %195 = vector.shape_cast %194 : vector<1x8x4xf32> to vector<8x4xf32>
      %c129_i32_122 = arith.constant 129 : i32
      %196 = arith.addi %170, %c129_i32_122 : i32
      %c3_i32_123 = arith.constant 3 : i32
      %197 = arith.shrsi %196, %c3_i32_123 : i32
      %198 = arith.index_cast %197 : i32 to index
      %c0_124 = arith.constant 0 : index
      %c0_125 = arith.constant 0 : index
      %199 = vector.load %arg3[%198, %c0_124, %c0_125] : memref<64x8x4xf32, #tpu.memory_space<vmem>>, vector<1x8x4xf32>
      %200 = vector.shape_cast %199 : vector<1x8x4xf32> to vector<8x4xf32>
      %c144_i32_126 = arith.constant 144 : i32
      %201 = arith.addi %170, %c144_i32_126 : i32
      %c3_i32_127 = arith.constant 3 : i32
      %202 = arith.shrsi %201, %c3_i32_127 : i32
      %203 = arith.index_cast %202 : i32 to index
      %c0_128 = arith.constant 0 : index
      %c0_129 = arith.constant 0 : index
      %204 = vector.load %arg3[%203, %c0_128, %c0_129] : memref<64x8x4xf32, #tpu.memory_space<vmem>>, vector<1x8x4xf32>
      %205 = vector.shape_cast %204 : vector<1x8x4xf32> to vector<8x4xf32>
      %c145_i32_130 = arith.constant 145 : i32
      %206 = arith.addi %170, %c145_i32_130 : i32
      %c3_i32_131 = arith.constant 3 : i32
      %207 = arith.shrsi %206, %c3_i32_131 : i32
      %208 = arith.index_cast %207 : i32 to index
      %c0_132 = arith.constant 0 : index
      %c0_133 = arith.constant 0 : index
      %209 = vector.load %arg3[%208, %c0_132, %c0_133] : memref<64x8x4xf32, #tpu.memory_space<vmem>>, vector<1x8x4xf32>
      %210 = vector.shape_cast %209 : vector<1x8x4xf32> to vector<8x4xf32>
      %211 = tpu.concatenate %175, %180, %185, %190, %195, %200, %205, %210 in 0 : vector<8x4xf32>, vector<8x4xf32>, vector<8x4xf32>, vector<8x4xf32>, vector<8x4xf32>, vector<8x4xf32>, vector<8x4xf32>, vector<8x4xf32> -> vector<64x4xf32>
      %c3_i32_134 = arith.constant 3 : i32
      %212 = vector.broadcast %c3_i32_134 : i32 to vector<8x1xi32>
      %213 = arith.cmpi eq, %1, %212 : vector<8x1xi32>
      %cst_135 = arith.constant 0.000000e+00 : f32
      %214 = vector.shape_cast %213 : vector<8x1xi1> to vector<8x1xi1>
      %215 = vector.broadcast %214 : vector<8x1xi1> to vector<8x64xi1>
      %216 = vector.broadcast %cst_135 : f32 to vector<8x64xf32>
      %217 = arith.select %215, %6, %216 : vector<8x64xi1>, vector<8x64xf32>
      %cst_136 = arith.constant dense<0.000000e+00> : vector<8x4xf32>
      %218 = tpu.matmul %217, %211, %cst_136 {dimension_numbers = #tpu.dot_dimension_numbers<[1], [0], [0], [1], [0, 0, 1, 1], [], []>} : vector<8x64xf32>, vector<64x4xf32>, vector<8x4xf32> -> vector<8x4xf32>
      %219 = arith.addf %166, %218 : vector<8x4xf32>
      %220 = arith.addi %0, %4 : i32
      %c4_i32 = arith.constant 4 : i32
      %221 = arith.addi %220, %c4_i32 : i32
      %222 = arith.index_cast %221 : i32 to index
      %223 = memref.load %arg1[%222] : memref<2048xi32, #tpu.memory_space<smem>>
      %c0_i32_137 = arith.constant 0 : i32
      %224 = arith.addi %223, %c0_i32_137 : i32
      %c3_i32_138 = arith.constant 3 : i32
      %225 = arith.shrsi %224, %c3_i32_138 : i32
      %226 = arith.index_cast %225 : i32 to index
      %c0_139 = arith.constant 0 : index
      %c0_140 = arith.constant 0 : index
      %227 = vector.load %arg3[%226, %c0_139, %c0_140] : memref<64x8x4xf32, #tpu.memory_space<vmem>>, vector<1x8x4xf32>
      %228 = vector.shape_cast %227 : vector<1x8x4xf32> to vector<8x4xf32>
      %c1_i32_141 = arith.constant 1 : i32
      %229 = arith.addi %223, %c1_i32_141 : i32
      %c3_i32_142 = arith.constant 3 : i32
      %230 = arith.shrsi %229, %c3_i32_142 : i32
      %231 = arith.index_cast %230 : i32 to index
      %c0_143 = arith.constant 0 : index
      %c0_144 = arith.constant 0 : index
      %232 = vector.load %arg3[%231, %c0_143, %c0_144] : memref<64x8x4xf32, #tpu.memory_space<vmem>>, vector<1x8x4xf32>
      %233 = vector.shape_cast %232 : vector<1x8x4xf32> to vector<8x4xf32>
      %c16_i32_145 = arith.constant 16 : i32
      %234 = arith.addi %223, %c16_i32_145 : i32
      %c3_i32_146 = arith.constant 3 : i32
      %235 = arith.shrsi %234, %c3_i32_146 : i32
      %236 = arith.index_cast %235 : i32 to index
      %c0_147 = arith.constant 0 : index
      %c0_148 = arith.constant 0 : index
      %237 = vector.load %arg3[%236, %c0_147, %c0_148] : memref<64x8x4xf32, #tpu.memory_space<vmem>>, vector<1x8x4xf32>
      %238 = vector.shape_cast %237 : vector<1x8x4xf32> to vector<8x4xf32>
      %c17_i32_149 = arith.constant 17 : i32
      %239 = arith.addi %223, %c17_i32_149 : i32
      %c3_i32_150 = arith.constant 3 : i32
      %240 = arith.shrsi %239, %c3_i32_150 : i32
      %241 = arith.index_cast %240 : i32 to index
      %c0_151 = arith.constant 0 : index
      %c0_152 = arith.constant 0 : index
      %242 = vector.load %arg3[%241, %c0_151, %c0_152] : memref<64x8x4xf32, #tpu.memory_space<vmem>>, vector<1x8x4xf32>
      %243 = vector.shape_cast %242 : vector<1x8x4xf32> to vector<8x4xf32>
      %c128_i32_153 = arith.constant 128 : i32
      %244 = arith.addi %223, %c128_i32_153 : i32
      %c3_i32_154 = arith.constant 3 : i32
      %245 = arith.shrsi %244, %c3_i32_154 : i32
      %246 = arith.index_cast %245 : i32 to index
      %c0_155 = arith.constant 0 : index
      %c0_156 = arith.constant 0 : index
      %247 = vector.load %arg3[%246, %c0_155, %c0_156] : memref<64x8x4xf32, #tpu.memory_space<vmem>>, vector<1x8x4xf32>
      %248 = vector.shape_cast %247 : vector<1x8x4xf32> to vector<8x4xf32>
      %c129_i32_157 = arith.constant 129 : i32
      %249 = arith.addi %223, %c129_i32_157 : i32
      %c3_i32_158 = arith.constant 3 : i32
      %250 = arith.shrsi %249, %c3_i32_158 : i32
      %251 = arith.index_cast %250 : i32 to index
      %c0_159 = arith.constant 0 : index
      %c0_160 = arith.constant 0 : index
      %252 = vector.load %arg3[%251, %c0_159, %c0_160] : memref<64x8x4xf32, #tpu.memory_space<vmem>>, vector<1x8x4xf32>
      %253 = vector.shape_cast %252 : vector<1x8x4xf32> to vector<8x4xf32>
      %c144_i32_161 = arith.constant 144 : i32
      %254 = arith.addi %223, %c144_i32_161 : i32
      %c3_i32_162 = arith.constant 3 : i32
      %255 = arith.shrsi %254, %c3_i32_162 : i32
      %256 = arith.index_cast %255 : i32 to index
      %c0_163 = arith.constant 0 : index
      %c0_164 = arith.constant 0 : index
      %257 = vector.load %arg3[%256, %c0_163, %c0_164] : memref<64x8x4xf32, #tpu.memory_space<vmem>>, vector<1x8x4xf32>
      %258 = vector.shape_cast %257 : vector<1x8x4xf32> to vector<8x4xf32>
      %c145_i32_165 = arith.constant 145 : i32
      %259 = arith.addi %223, %c145_i32_165 : i32
      %c3_i32_166 = arith.constant 3 : i32
      %260 = arith.shrsi %259, %c3_i32_166 : i32
      %261 = arith.index_cast %260 : i32 to index
      %c0_167 = arith.constant 0 : index
      %c0_168 = arith.constant 0 : index
      %262 = vector.load %arg3[%261, %c0_167, %c0_168] : memref<64x8x4xf32, #tpu.memory_space<vmem>>, vector<1x8x4xf32>
      %263 = vector.shape_cast %262 : vector<1x8x4xf32> to vector<8x4xf32>
      %264 = tpu.concatenate %228, %233, %238, %243, %248, %253, %258, %263 in 0 : vector<8x4xf32>, vector<8x4xf32>, vector<8x4xf32>, vector<8x4xf32>, vector<8x4xf32>, vector<8x4xf32>, vector<8x4xf32>, vector<8x4xf32> -> vector<64x4xf32>
      %c4_i32_169 = arith.constant 4 : i32
      %265 = vector.broadcast %c4_i32_169 : i32 to vector<8x1xi32>
      %266 = arith.cmpi eq, %1, %265 : vector<8x1xi32>
      %cst_170 = arith.constant 0.000000e+00 : f32
      %267 = vector.shape_cast %266 : vector<8x1xi1> to vector<8x1xi1>
      %268 = vector.broadcast %267 : vector<8x1xi1> to vector<8x64xi1>
      %269 = vector.broadcast %cst_170 : f32 to vector<8x64xf32>
      %270 = arith.select %268, %6, %269 : vector<8x64xi1>, vector<8x64xf32>
      %cst_171 = arith.constant dense<0.000000e+00> : vector<8x4xf32>
      %271 = tpu.matmul %270, %264, %cst_171 {dimension_numbers = #tpu.dot_dimension_numbers<[1], [0], [0], [1], [0, 0, 1, 1], [], []>} : vector<8x64xf32>, vector<64x4xf32>, vector<8x4xf32> -> vector<8x4xf32>
      %272 = arith.addf %219, %271 : vector<8x4xf32>
      %273 = arith.addi %0, %4 : i32
      %c5_i32 = arith.constant 5 : i32
      %274 = arith.addi %273, %c5_i32 : i32
      %275 = arith.index_cast %274 : i32 to index
      %276 = memref.load %arg1[%275] : memref<2048xi32, #tpu.memory_space<smem>>
      %c0_i32_172 = arith.constant 0 : i32
      %277 = arith.addi %276, %c0_i32_172 : i32
      %c3_i32_173 = arith.constant 3 : i32
      %278 = arith.shrsi %277, %c3_i32_173 : i32
      %279 = arith.index_cast %278 : i32 to index
      %c0_174 = arith.constant 0 : index
      %c0_175 = arith.constant 0 : index
      %280 = vector.load %arg3[%279, %c0_174, %c0_175] : memref<64x8x4xf32, #tpu.memory_space<vmem>>, vector<1x8x4xf32>
      %281 = vector.shape_cast %280 : vector<1x8x4xf32> to vector<8x4xf32>
      %c1_i32_176 = arith.constant 1 : i32
      %282 = arith.addi %276, %c1_i32_176 : i32
      %c3_i32_177 = arith.constant 3 : i32
      %283 = arith.shrsi %282, %c3_i32_177 : i32
      %284 = arith.index_cast %283 : i32 to index
      %c0_178 = arith.constant 0 : index
      %c0_179 = arith.constant 0 : index
      %285 = vector.load %arg3[%284, %c0_178, %c0_179] : memref<64x8x4xf32, #tpu.memory_space<vmem>>, vector<1x8x4xf32>
      %286 = vector.shape_cast %285 : vector<1x8x4xf32> to vector<8x4xf32>
      %c16_i32_180 = arith.constant 16 : i32
      %287 = arith.addi %276, %c16_i32_180 : i32
      %c3_i32_181 = arith.constant 3 : i32
      %288 = arith.shrsi %287, %c3_i32_181 : i32
      %289 = arith.index_cast %288 : i32 to index
      %c0_182 = arith.constant 0 : index
      %c0_183 = arith.constant 0 : index
      %290 = vector.load %arg3[%289, %c0_182, %c0_183] : memref<64x8x4xf32, #tpu.memory_space<vmem>>, vector<1x8x4xf32>
      %291 = vector.shape_cast %290 : vector<1x8x4xf32> to vector<8x4xf32>
      %c17_i32_184 = arith.constant 17 : i32
      %292 = arith.addi %276, %c17_i32_184 : i32
      %c3_i32_185 = arith.constant 3 : i32
      %293 = arith.shrsi %292, %c3_i32_185 : i32
      %294 = arith.index_cast %293 : i32 to index
      %c0_186 = arith.constant 0 : index
      %c0_187 = arith.constant 0 : index
      %295 = vector.load %arg3[%294, %c0_186, %c0_187] : memref<64x8x4xf32, #tpu.memory_space<vmem>>, vector<1x8x4xf32>
      %296 = vector.shape_cast %295 : vector<1x8x4xf32> to vector<8x4xf32>
      %c128_i32_188 = arith.constant 128 : i32
      %297 = arith.addi %276, %c128_i32_188 : i32
      %c3_i32_189 = arith.constant 3 : i32
      %298 = arith.shrsi %297, %c3_i32_189 : i32
      %299 = arith.index_cast %298 : i32 to index
      %c0_190 = arith.constant 0 : index
      %c0_191 = arith.constant 0 : index
      %300 = vector.load %arg3[%299, %c0_190, %c0_191] : memref<64x8x4xf32, #tpu.memory_space<vmem>>, vector<1x8x4xf32>
      %301 = vector.shape_cast %300 : vector<1x8x4xf32> to vector<8x4xf32>
      %c129_i32_192 = arith.constant 129 : i32
      %302 = arith.addi %276, %c129_i32_192 : i32
      %c3_i32_193 = arith.constant 3 : i32
      %303 = arith.shrsi %302, %c3_i32_193 : i32
      %304 = arith.index_cast %303 : i32 to index
      %c0_194 = arith.constant 0 : index
      %c0_195 = arith.constant 0 : index
      %305 = vector.load %arg3[%304, %c0_194, %c0_195] : memref<64x8x4xf32, #tpu.memory_space<vmem>>, vector<1x8x4xf32>
      %306 = vector.shape_cast %305 : vector<1x8x4xf32> to vector<8x4xf32>
      %c144_i32_196 = arith.constant 144 : i32
      %307 = arith.addi %276, %c144_i32_196 : i32
      %c3_i32_197 = arith.constant 3 : i32
      %308 = arith.shrsi %307, %c3_i32_197 : i32
      %309 = arith.index_cast %308 : i32 to index
      %c0_198 = arith.constant 0 : index
      %c0_199 = arith.constant 0 : index
      %310 = vector.load %arg3[%309, %c0_198, %c0_199] : memref<64x8x4xf32, #tpu.memory_space<vmem>>, vector<1x8x4xf32>
      %311 = vector.shape_cast %310 : vector<1x8x4xf32> to vector<8x4xf32>
      %c145_i32_200 = arith.constant 145 : i32
      %312 = arith.addi %276, %c145_i32_200 : i32
      %c3_i32_201 = arith.constant 3 : i32
      %313 = arith.shrsi %312, %c3_i32_201 : i32
      %314 = arith.index_cast %313 : i32 to index
      %c0_202 = arith.constant 0 : index
      %c0_203 = arith.constant 0 : index
      %315 = vector.load %arg3[%314, %c0_202, %c0_203] : memref<64x8x4xf32, #tpu.memory_space<vmem>>, vector<1x8x4xf32>
      %316 = vector.shape_cast %315 : vector<1x8x4xf32> to vector<8x4xf32>
      %317 = tpu.concatenate %281, %286, %291, %296, %301, %306, %311, %316 in 0 : vector<8x4xf32>, vector<8x4xf32>, vector<8x4xf32>, vector<8x4xf32>, vector<8x4xf32>, vector<8x4xf32>, vector<8x4xf32>, vector<8x4xf32> -> vector<64x4xf32>
      %c5_i32_204 = arith.constant 5 : i32
      %318 = vector.broadcast %c5_i32_204 : i32 to vector<8x1xi32>
      %319 = arith.cmpi eq, %1, %318 : vector<8x1xi32>
      %cst_205 = arith.constant 0.000000e+00 : f32
      %320 = vector.shape_cast %319 : vector<8x1xi1> to vector<8x1xi1>
      %321 = vector.broadcast %320 : vector<8x1xi1> to vector<8x64xi1>
      %322 = vector.broadcast %cst_205 : f32 to vector<8x64xf32>
      %323 = arith.select %321, %6, %322 : vector<8x64xi1>, vector<8x64xf32>
      %cst_206 = arith.constant dense<0.000000e+00> : vector<8x4xf32>
      %324 = tpu.matmul %323, %317, %cst_206 {dimension_numbers = #tpu.dot_dimension_numbers<[1], [0], [0], [1], [0, 0, 1, 1], [], []>} : vector<8x64xf32>, vector<64x4xf32>, vector<8x4xf32> -> vector<8x4xf32>
      %325 = arith.addf %272, %324 : vector<8x4xf32>
      %326 = arith.addi %0, %4 : i32
      %c6_i32 = arith.constant 6 : i32
      %327 = arith.addi %326, %c6_i32 : i32
      %328 = arith.index_cast %327 : i32 to index
      %329 = memref.load %arg1[%328] : memref<2048xi32, #tpu.memory_space<smem>>
      %c0_i32_207 = arith.constant 0 : i32
      %330 = arith.addi %329, %c0_i32_207 : i32
      %c3_i32_208 = arith.constant 3 : i32
      %331 = arith.shrsi %330, %c3_i32_208 : i32
      %332 = arith.index_cast %331 : i32 to index
      %c0_209 = arith.constant 0 : index
      %c0_210 = arith.constant 0 : index
      %333 = vector.load %arg3[%332, %c0_209, %c0_210] : memref<64x8x4xf32, #tpu.memory_space<vmem>>, vector<1x8x4xf32>
      %334 = vector.shape_cast %333 : vector<1x8x4xf32> to vector<8x4xf32>
      %c1_i32_211 = arith.constant 1 : i32
      %335 = arith.addi %329, %c1_i32_211 : i32
      %c3_i32_212 = arith.constant 3 : i32
      %336 = arith.shrsi %335, %c3_i32_212 : i32
      %337 = arith.index_cast %336 : i32 to index
      %c0_213 = arith.constant 0 : index
      %c0_214 = arith.constant 0 : index
      %338 = vector.load %arg3[%337, %c0_213, %c0_214] : memref<64x8x4xf32, #tpu.memory_space<vmem>>, vector<1x8x4xf32>
      %339 = vector.shape_cast %338 : vector<1x8x4xf32> to vector<8x4xf32>
      %c16_i32_215 = arith.constant 16 : i32
      %340 = arith.addi %329, %c16_i32_215 : i32
      %c3_i32_216 = arith.constant 3 : i32
      %341 = arith.shrsi %340, %c3_i32_216 : i32
      %342 = arith.index_cast %341 : i32 to index
      %c0_217 = arith.constant 0 : index
      %c0_218 = arith.constant 0 : index
      %343 = vector.load %arg3[%342, %c0_217, %c0_218] : memref<64x8x4xf32, #tpu.memory_space<vmem>>, vector<1x8x4xf32>
      %344 = vector.shape_cast %343 : vector<1x8x4xf32> to vector<8x4xf32>
      %c17_i32_219 = arith.constant 17 : i32
      %345 = arith.addi %329, %c17_i32_219 : i32
      %c3_i32_220 = arith.constant 3 : i32
      %346 = arith.shrsi %345, %c3_i32_220 : i32
      %347 = arith.index_cast %346 : i32 to index
      %c0_221 = arith.constant 0 : index
      %c0_222 = arith.constant 0 : index
      %348 = vector.load %arg3[%347, %c0_221, %c0_222] : memref<64x8x4xf32, #tpu.memory_space<vmem>>, vector<1x8x4xf32>
      %349 = vector.shape_cast %348 : vector<1x8x4xf32> to vector<8x4xf32>
      %c128_i32_223 = arith.constant 128 : i32
      %350 = arith.addi %329, %c128_i32_223 : i32
      %c3_i32_224 = arith.constant 3 : i32
      %351 = arith.shrsi %350, %c3_i32_224 : i32
      %352 = arith.index_cast %351 : i32 to index
      %c0_225 = arith.constant 0 : index
      %c0_226 = arith.constant 0 : index
      %353 = vector.load %arg3[%352, %c0_225, %c0_226] : memref<64x8x4xf32, #tpu.memory_space<vmem>>, vector<1x8x4xf32>
      %354 = vector.shape_cast %353 : vector<1x8x4xf32> to vector<8x4xf32>
      %c129_i32_227 = arith.constant 129 : i32
      %355 = arith.addi %329, %c129_i32_227 : i32
      %c3_i32_228 = arith.constant 3 : i32
      %356 = arith.shrsi %355, %c3_i32_228 : i32
      %357 = arith.index_cast %356 : i32 to index
      %c0_229 = arith.constant 0 : index
      %c0_230 = arith.constant 0 : index
      %358 = vector.load %arg3[%357, %c0_229, %c0_230] : memref<64x8x4xf32, #tpu.memory_space<vmem>>, vector<1x8x4xf32>
      %359 = vector.shape_cast %358 : vector<1x8x4xf32> to vector<8x4xf32>
      %c144_i32_231 = arith.constant 144 : i32
      %360 = arith.addi %329, %c144_i32_231 : i32
      %c3_i32_232 = arith.constant 3 : i32
      %361 = arith.shrsi %360, %c3_i32_232 : i32
      %362 = arith.index_cast %361 : i32 to index
      %c0_233 = arith.constant 0 : index
      %c0_234 = arith.constant 0 : index
      %363 = vector.load %arg3[%362, %c0_233, %c0_234] : memref<64x8x4xf32, #tpu.memory_space<vmem>>, vector<1x8x4xf32>
      %364 = vector.shape_cast %363 : vector<1x8x4xf32> to vector<8x4xf32>
      %c145_i32_235 = arith.constant 145 : i32
      %365 = arith.addi %329, %c145_i32_235 : i32
      %c3_i32_236 = arith.constant 3 : i32
      %366 = arith.shrsi %365, %c3_i32_236 : i32
      %367 = arith.index_cast %366 : i32 to index
      %c0_237 = arith.constant 0 : index
      %c0_238 = arith.constant 0 : index
      %368 = vector.load %arg3[%367, %c0_237, %c0_238] : memref<64x8x4xf32, #tpu.memory_space<vmem>>, vector<1x8x4xf32>
      %369 = vector.shape_cast %368 : vector<1x8x4xf32> to vector<8x4xf32>
      %370 = tpu.concatenate %334, %339, %344, %349, %354, %359, %364, %369 in 0 : vector<8x4xf32>, vector<8x4xf32>, vector<8x4xf32>, vector<8x4xf32>, vector<8x4xf32>, vector<8x4xf32>, vector<8x4xf32>, vector<8x4xf32> -> vector<64x4xf32>
      %c6_i32_239 = arith.constant 6 : i32
      %371 = vector.broadcast %c6_i32_239 : i32 to vector<8x1xi32>
      %372 = arith.cmpi eq, %1, %371 : vector<8x1xi32>
      %cst_240 = arith.constant 0.000000e+00 : f32
      %373 = vector.shape_cast %372 : vector<8x1xi1> to vector<8x1xi1>
      %374 = vector.broadcast %373 : vector<8x1xi1> to vector<8x64xi1>
      %375 = vector.broadcast %cst_240 : f32 to vector<8x64xf32>
      %376 = arith.select %374, %6, %375 : vector<8x64xi1>, vector<8x64xf32>
      %cst_241 = arith.constant dense<0.000000e+00> : vector<8x4xf32>
      %377 = tpu.matmul %376, %370, %cst_241 {dimension_numbers = #tpu.dot_dimension_numbers<[1], [0], [0], [1], [0, 0, 1, 1], [], []>} : vector<8x64xf32>, vector<64x4xf32>, vector<8x4xf32> -> vector<8x4xf32>
      %378 = arith.addf %325, %377 : vector<8x4xf32>
      %379 = arith.addi %0, %4 : i32
      %c7_i32 = arith.constant 7 : i32
      %380 = arith.addi %379, %c7_i32 : i32
      %381 = arith.index_cast %380 : i32 to index
      %382 = memref.load %arg1[%381] : memref<2048xi32, #tpu.memory_space<smem>>
      %c0_i32_242 = arith.constant 0 : i32
      %383 = arith.addi %382, %c0_i32_242 : i32
      %c3_i32_243 = arith.constant 3 : i32
      %384 = arith.shrsi %383, %c3_i32_243 : i32
      %385 = arith.index_cast %384 : i32 to index
      %c0_244 = arith.constant 0 : index
      %c0_245 = arith.constant 0 : index
      %386 = vector.load %arg3[%385, %c0_244, %c0_245] : memref<64x8x4xf32, #tpu.memory_space<vmem>>, vector<1x8x4xf32>
      %387 = vector.shape_cast %386 : vector<1x8x4xf32> to vector<8x4xf32>
      %c1_i32_246 = arith.constant 1 : i32
      %388 = arith.addi %382, %c1_i32_246 : i32
      %c3_i32_247 = arith.constant 3 : i32
      %389 = arith.shrsi %388, %c3_i32_247 : i32
      %390 = arith.index_cast %389 : i32 to index
      %c0_248 = arith.constant 0 : index
      %c0_249 = arith.constant 0 : index
      %391 = vector.load %arg3[%390, %c0_248, %c0_249] : memref<64x8x4xf32, #tpu.memory_space<vmem>>, vector<1x8x4xf32>
      %392 = vector.shape_cast %391 : vector<1x8x4xf32> to vector<8x4xf32>
      %c16_i32_250 = arith.constant 16 : i32
      %393 = arith.addi %382, %c16_i32_250 : i32
      %c3_i32_251 = arith.constant 3 : i32
      %394 = arith.shrsi %393, %c3_i32_251 : i32
      %395 = arith.index_cast %394 : i32 to index
      %c0_252 = arith.constant 0 : index
      %c0_253 = arith.constant 0 : index
      %396 = vector.load %arg3[%395, %c0_252, %c0_253] : memref<64x8x4xf32, #tpu.memory_space<vmem>>, vector<1x8x4xf32>
      %397 = vector.shape_cast %396 : vector<1x8x4xf32> to vector<8x4xf32>
      %c17_i32_254 = arith.constant 17 : i32
      %398 = arith.addi %382, %c17_i32_254 : i32
      %c3_i32_255 = arith.constant 3 : i32
      %399 = arith.shrsi %398, %c3_i32_255 : i32
      %400 = arith.index_cast %399 : i32 to index
      %c0_256 = arith.constant 0 : index
      %c0_257 = arith.constant 0 : index
      %401 = vector.load %arg3[%400, %c0_256, %c0_257] : memref<64x8x4xf32, #tpu.memory_space<vmem>>, vector<1x8x4xf32>
      %402 = vector.shape_cast %401 : vector<1x8x4xf32> to vector<8x4xf32>
      %c128_i32_258 = arith.constant 128 : i32
      %403 = arith.addi %382, %c128_i32_258 : i32
      %c3_i32_259 = arith.constant 3 : i32
      %404 = arith.shrsi %403, %c3_i32_259 : i32
      %405 = arith.index_cast %404 : i32 to index
      %c0_260 = arith.constant 0 : index
      %c0_261 = arith.constant 0 : index
      %406 = vector.load %arg3[%405, %c0_260, %c0_261] : memref<64x8x4xf32, #tpu.memory_space<vmem>>, vector<1x8x4xf32>
      %407 = vector.shape_cast %406 : vector<1x8x4xf32> to vector<8x4xf32>
      %c129_i32_262 = arith.constant 129 : i32
      %408 = arith.addi %382, %c129_i32_262 : i32
      %c3_i32_263 = arith.constant 3 : i32
      %409 = arith.shrsi %408, %c3_i32_263 : i32
      %410 = arith.index_cast %409 : i32 to index
      %c0_264 = arith.constant 0 : index
      %c0_265 = arith.constant 0 : index
      %411 = vector.load %arg3[%410, %c0_264, %c0_265] : memref<64x8x4xf32, #tpu.memory_space<vmem>>, vector<1x8x4xf32>
      %412 = vector.shape_cast %411 : vector<1x8x4xf32> to vector<8x4xf32>
      %c144_i32_266 = arith.constant 144 : i32
      %413 = arith.addi %382, %c144_i32_266 : i32
      %c3_i32_267 = arith.constant 3 : i32
      %414 = arith.shrsi %413, %c3_i32_267 : i32
      %415 = arith.index_cast %414 : i32 to index
      %c0_268 = arith.constant 0 : index
      %c0_269 = arith.constant 0 : index
      %416 = vector.load %arg3[%415, %c0_268, %c0_269] : memref<64x8x4xf32, #tpu.memory_space<vmem>>, vector<1x8x4xf32>
      %417 = vector.shape_cast %416 : vector<1x8x4xf32> to vector<8x4xf32>
      %c145_i32_270 = arith.constant 145 : i32
      %418 = arith.addi %382, %c145_i32_270 : i32
      %c3_i32_271 = arith.constant 3 : i32
      %419 = arith.shrsi %418, %c3_i32_271 : i32
      %420 = arith.index_cast %419 : i32 to index
      %c0_272 = arith.constant 0 : index
      %c0_273 = arith.constant 0 : index
      %421 = vector.load %arg3[%420, %c0_272, %c0_273] : memref<64x8x4xf32, #tpu.memory_space<vmem>>, vector<1x8x4xf32>
      %422 = vector.shape_cast %421 : vector<1x8x4xf32> to vector<8x4xf32>
      %423 = tpu.concatenate %387, %392, %397, %402, %407, %412, %417, %422 in 0 : vector<8x4xf32>, vector<8x4xf32>, vector<8x4xf32>, vector<8x4xf32>, vector<8x4xf32>, vector<8x4xf32>, vector<8x4xf32>, vector<8x4xf32> -> vector<64x4xf32>
      %c7_i32_274 = arith.constant 7 : i32
      %424 = vector.broadcast %c7_i32_274 : i32 to vector<8x1xi32>
      %425 = arith.cmpi eq, %1, %424 : vector<8x1xi32>
      %cst_275 = arith.constant 0.000000e+00 : f32
      %426 = vector.shape_cast %425 : vector<8x1xi1> to vector<8x1xi1>
      %427 = vector.broadcast %426 : vector<8x1xi1> to vector<8x64xi1>
      %428 = vector.broadcast %cst_275 : f32 to vector<8x64xf32>
      %429 = arith.select %427, %6, %428 : vector<8x64xi1>, vector<8x64xf32>
      %cst_276 = arith.constant dense<0.000000e+00> : vector<8x4xf32>
      %430 = tpu.matmul %429, %423, %cst_276 {dimension_numbers = #tpu.dot_dimension_numbers<[1], [0], [0], [1], [0, 0, 1, 1], [], []>} : vector<8x64xf32>, vector<64x4xf32>, vector<8x4xf32> -> vector<8x4xf32>
      %431 = arith.addf %378, %430 : vector<8x4xf32>
      %432 = arith.index_cast %4 : i32 to index
      %c0_277 = arith.constant 0 : index
      %433 = vector.load %arg4[%432, %c0_277] : memref<2048x4xf32, #tpu.memory_space<vmem>>, vector<8x4xf32>
      tpu.vector_store %arg4[%432, %c0_277], %431 {strides = array<i32>} : memref<2048x4xf32, #tpu.memory_space<vmem>>, vector<8x4xf32>,
    }
    %c256_i32_0 = arith.constant 256 : i32
    return
  }
  func.func @transform_0(%arg0: i32, %arg1: memref<2048xi32, #tpu.memory_space<smem>>) -> (i32, i32) {
    %c0_i32 = arith.constant 0 : i32
    %c0_i32_0 = arith.constant 0 : i32
    return %arg0, %c0_i32 : i32, i32
  }
  func.func @transform_1(%arg0: i32, %arg1: memref<2048xi32, #tpu.memory_space<smem>>) -> (i32, i32, i32) {
    %c0_i32 = arith.constant 0 : i32
    %c0_i32_0 = arith.constant 0 : i32
    %c0_i32_1 = arith.constant 0 : i32
    %c0_i32_2 = arith.constant 0 : i32
    return %c0_i32, %c0_i32_0, %c0_i32_1 : i32, i32, i32
  }
  func.func @transform_2(%arg0: i32, %arg1: memref<2048xi32, #tpu.memory_space<smem>>) -> (i32, i32) {
    %c0_i32 = arith.constant 0 : i32
    %c0_i32_0 = arith.constant 0 : i32
    return %arg0, %c0_i32 : i32, i32
  }
}

</mosaic_0001>

<bundles_post_ra>
// kernel: tpu_custom_call.1
= control target key start
LH: loop header
LB: loop body
LE: loop exit
PB: predicated region body
PF: predicated region fallthrough
CT: control target
= control target key end

     0   :  { %s1972_s0 = inlined_call_operand.vmem [shape: s32[2048], index: 0, kind: input, shape index: {}]   ;;  %s1973_s1 = inlined_call_operand.vmem [shape: f32[2048,64], index: 1, kind: input, shape index: {}]   ;;  %s1974_s2 = inlined_call_operand.vmem [shape: f32[64,8,4], index: 2, kind: input, shape index: {}]   ;;  %s1975_s3 = inlined_call_operand.vmem [shape: f32[2048,4], index: 3, kind: output, shape index: {}]  }
   0x1   :  { %s8_s14 = sshll.u32 %s1972_s0, 4  ;;  %s9_s14 = int_to_ptr.vmem [resolvable:$true] %s8_s14 }
   0x2   :  { %s1543_s15 = scalar_lea.vmem %s9_s14, 256  ;;  %p1548_p1 = scmp.lt.s32.totalorder %s9_s14, %s9_s14 }
   0x3   :  { %p1544_p0 = scmp.ne.s32.totalorder %s9_s14, %s1543_s15  ;;  %p1549_p2 = scmp.lt.s32.totalorder %s1543_s15, %s1543_s15 }
   0x5   :  { %p1550_p3 = por %p1549_p2, %p1548_p1 }
   0x7   :  { %p1551_p4 = pnand %p1550_p3, %p1544_p0 }
   0x9   :  { %1554 = shalt.err (!%p1551_p4)  }
   0xa   :  { %s1565_s16 = smov [#allocation3]  }
   0xb   :  { %11 = dma.vmem_to_smem %s9_s14, 256, %s1565_s16, [#allocation2] }
   0xc   :  { %1559 = dma.done.wait [#allocation2], 256 }
   0xd   :  { %1560 = vsyncadd [#allocation2], 4294967040 }
   0xe   :  { %13 = sfence }
   0xf   :  { %v19_v0 = vlaneseq  ;;  %s1594_s17 = smov 0  }
  0x11   :  { %v1592_v1 = vshrl.u32 %v19_v0, 7 }
  0x12 LB: > { %v1566_v2 = vmov 0.0|0.0   ;;  %s1602_s0 = sshll.u32 %s1563_s17, 3  ;;  %vm1567_vm0 = vmmov 0   ;;  %v1568_v3 = vmov 0.0   ;;  %vm120_vm2 = vcmask 523264   ;;  %s26_s17 = sadd.s32 1, %s1563_s17   ;;  %s1563_s17 = sphi %s1594_s17, %s26_s17  }
  0x13   : > { %1422 = vmatprep.subr.bf16.mxu1 %v1566_v2  ;;  %1470 = vmatprep.subr.bf16.mxu0 %v1566_v2  ;;  %s75_s18 = sadd.s32 1, %s1602_s0  ;;  %s505_s19 = sadd.s32 4, %s1602_s0  ;;  %vm116_vm1 = vcmp.eq.s32.totalorder %v1592_v1, 1  ;;  %vm546_vm3 = vcmp.eq.s32.totalorder %v1592_v1, 4  ;;  %vm71_vm4 = vcmp.eq.s32.totalorder %v1592_v1, 0  ;;  %vm665_vm5 = vcmp.eq.s32.totalorder %v1592_v1, 5 }
  0x14   : > { %1286 = vmatprep.mubr.msk.f32.mxu1 %vm1567_vm0, %v1568_v3  ;;  %1362 = vmatprep.mubr.msk.f32.mxu0 %vm1567_vm0, %v1568_v3  ;;  %s1610_s20 = sld [smem:[#allocation3 + %s75_s18]]  ;;  %s28_s24 = scalar_lea.vmem %s1973_s1, %s1602_s0  ;;  %vm308_vm6 = vcmp.eq.s32.totalorder %v1592_v1, 2  ;;  %vm784_vm7 = vcmp.eq.s32.totalorder %v1592_v1, 6  ;;  %vm427_vm8 = vcmp.eq.s32.totalorder %v1592_v1, 3  ;;  %vm903_vm9 = vcmp.eq.s32.totalorder %v1592_v1, 7 }
  0x15   : > { %s1612_s21 = sld [smem:[#allocation3 + %s505_s19]]  ;;  %s624_s26 = sadd.s32 5, %s1602_s0  ;;  %v1702_v24 = vld [vmem:[%s28_s24] sm:$0xff]  ;;  %vm982_vm10 = vcmask 31744  }
  0x16   : > { %s1619_s25 = sld [smem:[#allocation3 + %s1602_s0]]  ;;  %s267_s27 = sadd.s32 2, %s1602_s0  ;;  %v119_v27 = vsel %vm116_vm1, %v1702_v24, 0.0  ;;  %v549_v31 = vsel %vm546_vm3, %v1702_v24, 0.0  ;;  %v74_v53 = vsel %vm71_vm4, %v1702_v24, 0.0  ;;  %v668_v58 = vsel %vm665_vm5, %v1702_v24, 0.0 }
  0x17   : > { %s1623_s28 = sld [smem:[#allocation3 + %s624_s26]]  ;;  %s743_s30 = sadd.s32 6, %s1602_s0 }
  0x18   : > { %s1625_s29 = sld [smem:[#allocation3 + %s267_s27]]  ;;  %s386_s4 = sadd.s32 3, %s1602_s0 }
  0x19   : > { %s1629_s5 = sld [smem:[#allocation3 + %s743_s30]]  ;;  %p23_p5 = scmp.ge.s32.totalorder %s26_s17, 256  }
  0x1a   : > { %s1631_s6 = sld [smem:[#allocation3 + %s386_s4]]  ;;  %s77_s7 = sshra.s32 %s1610_s20, 3 }
  0x1b   : > { %s81_s8 = sadd.s32 1, %s1610_s20  ;;  %s1134_s9 = sshll.u32 %s77_s7, 3 }
  0x1c   : > { %s82_s10 = sshra.s32 %s81_s8, 3  ;;  %s79_s13 = scalar_lea.vmem %s1974_s2, %s1134_s9 }
  0x1d   : > { %s1135_s14 = sshll.u32 %s82_s10, 3  ;;  %v80_v4 = vld [vmem:[%s79_s13] sm:$0xff]  ;;  %s507_s19 = sshra.s32 %s1612_s21, 3 }
  0x1e   : > { %s84_s18 = scalar_lea.vmem %s1974_s2, %s1135_s14  ;;  %s1162_s22 = sshll.u32 %s507_s19, 3 }
  0x1f   : > { %v85_v5 = vld [vmem:[%s84_s18] sm:$0xff]  ;;  %s511_s23 = sadd.s32 1, %s1612_s21  ;;  %s509_s30 = scalar_lea.vmem %s1974_s2, %s1162_s22 }
  0x20   : > { %v1423_v6 = vpack.c.bf16 %v85_v5, %v80_v4  ;;  %s512_s4 = sshra.s32 %s511_s23, 3  ;;  %v510_v7 = vld [vmem:[%s509_s30] sm:$0xff]  ;;  %s86_s8 = sadd.s32 16, %s1610_s20 }
  0x21   : > { %s1163_s7 = sshll.u32 %s512_s4, 3  ;;  %s87_s12 = sshra.s32 %s86_s8, 3 }
  0x22   : > { %1424 = vmatpush3.bf16.msra.mxu1 %v1423_v6  ;;  %s514_s11 = scalar_lea.vmem %s1974_s2, %s1163_s7  ;;  %s1136_s13 = sshll.u32 %s87_s12, 3 }
  0x23   : > { %v515_v8 = vld [vmem:[%s514_s11] sm:$0xff]  ;;  %1425 = vmatprep.subr.bf16.mxu1 %v1566_v2  ;;  %s91_s14 = sadd.s32 17, %s1610_s20  ;;  %s89_s18 = scalar_lea.vmem %s1974_s2, %s1136_s13 }
  0x24   : > { %v1471_v9 = vpack.c.bf16 %v515_v8, %v510_v7  ;;  %s92_s19 = sshra.s32 %s91_s14, 3  ;;  %v90_v10 = vld [vmem:[%s89_s18] sm:$0xff]  ;;  %s516_s23 = sadd.s32 16, %s1612_s21 }
  0x25   : > { %s1137_s22 = sshll.u32 %s92_s19, 3  ;;  %s517_s4 = sshra.s32 %s516_s23, 3 }
  0x26   : > { %1472 = vmatpush3.bf16.msra.mxu0 %v1471_v9  ;;  %s94_s30 = scalar_lea.vmem %s1974_s2, %s1137_s22  ;;  %s1164_s7 = sshll.u32 %s517_s4, 3 }
  0x27   : > { %1473 = vmatprep.subr.bf16.mxu0 %v1566_v2  ;;  %v95_v11 = vld [vmem:[%s94_s30] sm:$0xff]  ;;  %s521_s8 = sadd.s32 17, %s1612_s21  ;;  %s519_s11 = scalar_lea.vmem %s1974_s2, %s1164_s7 }
  0x28   : > { %v1426_v12 = vpack.c.bf16 %v95_v11, %v90_v10  ;;  %s522_s12 = sshra.s32 %s521_s8, 3  ;;  %v520_v13 = vld [vmem:[%s519_s11] sm:$0xff]  ;;  %s96_s14 = sadd.s32 128, %s1610_s20 }
  0x29   : > { %s1165_s13 = sshll.u32 %s522_s12, 3  ;;  %s97_s19 = sshra.s32 %s96_s14, 3 }
  0x2a   : > { %1427 = vmatpush3.bf16.msra.mxu1 %v1426_v12  ;;  %s524_s18 = scalar_lea.vmem %s1974_s2, %s1165_s13  ;;  %s1138_s22 = sshll.u32 %s97_s19, 3 }
  0x2b   : > { %v525_v14 = vld [vmem:[%s524_s18] sm:$0xff]  ;;  %1428 = vmatprep.subr.bf16.mxu1 %v1566_v2  ;;  %s101_s23 = sadd.s32 129, %s1610_s20  ;;  %s99_s30 = scalar_lea.vmem %s1974_s2, %s1138_s22 }
  0x2c   : > { %v1474_v15 = vpack.c.bf16 %v525_v14, %v520_v13  ;;  %s102_s4 = sshra.s32 %s101_s23, 3  ;;  %v100_v16 = vld [vmem:[%s99_s30] sm:$0xff]  ;;  %s526_s8 = sadd.s32 128, %s1612_s21 }
  0x2d   : > { %s1139_s7 = sshll.u32 %s102_s4, 3  ;;  %s527_s12 = sshra.s32 %s526_s8, 3 }
  0x2e   : > { %1475 = vmatpush3.bf16.msra.mxu0 %v1474_v15  ;;  %s104_s11 = scalar_lea.vmem %s1974_s2, %s1139_s7  ;;  %s1166_s13 = sshll.u32 %s527_s12, 3 }
  0x2f   : > { %1476 = vmatprep.subr.bf16.mxu0 %v1566_v2  ;;  %v105_v17 = vld [vmem:[%s104_s11] sm:$0xff]  ;;  %s531_s14 = sadd.s32 129, %s1612_s21  ;;  %s529_s18 = scalar_lea.vmem %s1974_s2, %s1166_s13 }
  0x30   : > { %v1429_v18 = vpack.c.bf16 %v105_v17, %v100_v16  ;;  %s532_s19 = sshra.s32 %s531_s14, 3  ;;  %v530_v19 = vld [vmem:[%s529_s18] sm:$0xff]  ;;  %s106_s23 = sadd.s32 144, %s1610_s20 }
  0x31   : > { %s1167_s22 = sshll.u32 %s532_s19, 3  ;;  %s107_s4 = sshra.s32 %s106_s23, 3 }
  0x32   : > { %1430 = vmatpush3.bf16.msra.mxu1 %v1429_v18  ;;  %s534_s30 = scalar_lea.vmem %s1974_s2, %s1167_s22  ;;  %s1140_s7 = sshll.u32 %s107_s4, 3  ;;  %v311_v18 = vsel %vm308_vm6, %v1702_v24, 0.0 }
  0x33   : > { %v535_v20 = vld [vmem:[%s534_s30] sm:$0xff]  ;;  %1431 = vmatprep.subr.bf16.mxu1 %v1566_v2  ;;  %s111_s8 = sadd.s32 145, %s1610_s20  ;;  %s109_s11 = scalar_lea.vmem %s1974_s2, %s1140_s7 }
  0x34   : > { %v1477_v21 = vpack.c.bf16 %v535_v20, %v530_v19  ;;  %s112_s12 = sshra.s32 %s111_s8, 3  ;;  %v110_v22 = vld [vmem:[%s109_s11] sm:$0xff]  ;;  %s536_s14 = sadd.s32 144, %s1612_s21 }
  0x35   : > { %s1141_s13 = sshll.u32 %s112_s12, 3  ;;  %s537_s19 = sshra.s32 %s536_s14, 3 }
  0x36   : > { %1478 = vmatpush3.bf16.msra.mxu0 %v1477_v21  ;;  %s114_s18 = scalar_lea.vmem %s1974_s2, %s1141_s13  ;;  %s1168_s20 = sshll.u32 %s537_s19, 3 }
  0x37   : > { %1479 = vmatprep.subr.bf16.mxu0 %v1566_v2  ;;  %v115_v23 = vld [vmem:[%s114_s18] sm:$0xff]  ;;  %s541_s22 = sadd.s32 145, %s1612_s21  ;;  %s539_s4 = scalar_lea.vmem %s1974_s2, %s1168_s20 }
  0x38   : > { %v1432_v25 = vpack.c.bf16 %v115_v23, %v110_v22  ;;  %s542_s7 = sshra.s32 %s541_s22, 3  ;;  %v540_v26 = vld [vmem:[%s539_s4] sm:$0xff]  ;;  %s32_s9 = sshra.s32 %s1619_s25, 3  ;;  %v787_v23 = vsel %vm784_vm7, %v1702_v24, 0.0 }
  0x39   : > { %s1169_s8 = sshll.u32 %s542_s7, 3  ;;  %s1126_s24 = sshll.u32 %s32_s9, 3 }
  0x3a   : > { %1433 = vmatpush3.bf16.msra.mxu1 %v1432_v25  ;;  %s544_s11 = scalar_lea.vmem %s1974_s2, %s1169_s8  ;;  %s34_s14 = scalar_lea.vmem %s1974_s2, %s1126_s24 }
  0x3b   : > { %v545_v28 = vld [vmem:[%s544_s11] sm:$0xff]  ;;  %1434 = vmatprep.subr.bf16.mxu1 %v1566_v2  ;;  %s36_s15 = sadd.s32 1, %s1619_s25  ;;  %s626_s18 = sshra.s32 %s1623_s28, 3 }
  0x3c   : > { %v1480_v29 = vpack.c.bf16 %v545_v28, %v540_v26  ;;  %s37_s16 = sshra.s32 %s36_s15, 3  ;;  %v35_v30 = vld [vmem:[%s34_s14] sm:$0xff]  ;;  %s1171_s20 = sshll.u32 %s626_s18, 3 }
  0x3d   : > { %1287 = vmatmul.mubr.msk.f32.vlgmr.msra.gmra.mrb[0].mxu1 %vm120_vm2, %v119_v27  ;;  %s1127_s19 = sshll.u32 %s37_s16, 3  ;;  %s628_s4 = scalar_lea.vmem %s1974_s2, %s1171_s20 }
  0x3e   : > { %1481 = vmatpush3.bf16.msra.mxu0 %v1480_v29  ;;  %s39_s26 = scalar_lea.vmem %s1974_s2, %s1127_s19  ;;  %1305 = vmatprep.mubr.msk.f32.mxu1 %vm1567_vm0, %v1568_v3  ;;  %s630_s7 = sadd.s32 1, %s1623_s28  ;;  %v629_v34 = vld [vmem:[%s628_s4] sm:$0xff] }
  0x3f   : > { %1482 = vmatprep.subr.bf16.mxu0 %v1566_v2  ;;  %v40_v32 = vld [vmem:[%s39_s26] sm:$0xff]  ;;  %s41_s8 = sadd.s32 16, %s1619_s25  ;;  %s631_s9 = sshra.s32 %s630_s7, 3 }
  0x40   : > { %v1435_v33 = vpack.c.bf16 %v40_v32, %v35_v30  ;;  %s42_s21 = sshra.s32 %s41_s8, 3  ;;  %s1172_s10 = sshll.u32 %s631_s9, 3 }
  0x41   : > { %1363 = vmatmul.mubr.msk.f32.vlgmr.msra.gmra.mrb[0].mxu0 %vm120_vm2, %v549_v31  ;;  %s1128_s11 = sshll.u32 %s42_s21, 3  ;;  %s633_s13 = scalar_lea.vmem %s1974_s2, %s1172_s10 }
  0x42   : > { %1436 = vmatpush3.bf16.msra.mxu1 %v1435_v33  ;;  %s44_s16 = scalar_lea.vmem %s1974_s2, %s1128_s11  ;;  %1381 = vmatprep.mubr.msk.f32.mxu0 %vm1567_vm0, %v1568_v3  ;;  %v634_v35 = vld [vmem:[%s633_s13] sm:$0xff]  ;;  %s46_s18 = sadd.s32 17, %s1619_s25 }
  0x43   : > { %1437 = vmatprep.subr.bf16.mxu1 %v1566_v2  ;;  %s635_s19 = sadd.s32 16, %s1623_s28  ;;  %v1483_v36 = vpack.c.bf16 %v634_v35, %v629_v34  ;;  %s47_s20 = sshra.s32 %s46_s18, 3  ;;  %v45_v37 = vld [vmem:[%s44_s16] sm:$0xff] }
  0x44   : > { %s636_s22 = sshra.s32 %s635_s19, 3  ;;  %s1129_s23 = sshll.u32 %s47_s20, 3 }
  0x45   : > { %s1173_s26 = sshll.u32 %s636_s22, 3  ;;  %1484 = vmatpush3.bf16.msra.mxu0 %v1483_v36  ;;  %s49_s4 = scalar_lea.vmem %s1974_s2, %s1129_s23 }
  0x46   : > { %s638_s9 = scalar_lea.vmem %s1974_s2, %s1173_s26  ;;  %1485 = vmatprep.subr.bf16.mxu0 %v1566_v2  ;;  %v50_v38 = vld [vmem:[%s49_s4] sm:$0xff]  ;;  %s640_s21 = sadd.s32 17, %s1623_s28 }
  0x47   : > { %s51_s10 = sadd.s32 128, %s1619_s25  ;;  %v1438_v39 = vpack.c.bf16 %v50_v38, %v45_v37  ;;  %s641_s11 = sshra.s32 %s640_s21, 3  ;;  %v639_v40 = vld [vmem:[%s638_s9] sm:$0xff] }
  0x48   : > { %s52_s24 = sshra.s32 %s51_s10, 3  ;;  %s1174_s12 = sshll.u32 %s641_s11, 3 }
  0x49   : > { %s1130_s13 = sshll.u32 %s52_s24, 3  ;;  %1439 = vmatpush3.bf16.msra.mxu1 %v1438_v39  ;;  %s643_s16 = scalar_lea.vmem %s1974_s2, %s1174_s12 }
  0x4a   : > { %s54_s20 = scalar_lea.vmem %s1974_s2, %s1130_s13  ;;  %v644_v41 = vld [vmem:[%s643_s16] sm:$0xff]  ;;  %1440 = vmatprep.subr.bf16.mxu1 %v1566_v2  ;;  %s56_s22 = sadd.s32 129, %s1619_s25 }
  0x4b   : > { %s645_s23 = sadd.s32 128, %s1623_s28  ;;  %v1486_v42 = vpack.c.bf16 %v644_v41, %v639_v40  ;;  %s57_s26 = sshra.s32 %s56_s22, 3  ;;  %v55_v43 = vld [vmem:[%s54_s20] sm:$0xff] }
  0x4c   : > { %s646_s27 = sshra.s32 %s645_s23, 3  ;;  %s1131_s30 = sshll.u32 %s57_s26, 3 }
  0x4d   : > { %s1175_s4 = sshll.u32 %s646_s27, 3  ;;  %1487 = vmatpush3.bf16.msra.mxu0 %v1486_v42  ;;  %s59_s9 = scalar_lea.vmem %s1974_s2, %s1131_s30 }
  0x4e   : > { %s648_s11 = scalar_lea.vmem %s1974_s2, %s1175_s4  ;;  %1488 = vmatprep.subr.bf16.mxu0 %v1566_v2  ;;  %v60_v44 = vld [vmem:[%s59_s9] sm:$0xff]  ;;  %s650_s24 = sadd.s32 129, %s1623_s28 }
  0x4f   : > { %s61_s12 = sadd.s32 144, %s1619_s25  ;;  %v1441_v45 = vpack.c.bf16 %v60_v44, %v55_v43  ;;  %s651_s13 = sshra.s32 %s650_s24, 3  ;;  %v649_v46 = vld [vmem:[%s648_s11] sm:$0xff] }
  0x50   : > { %s62_s14 = sshra.s32 %s61_s12, 3  ;;  %s1176_s15 = sshll.u32 %s651_s13, 3 }
  0x51   : > { %s1132_s16 = sshll.u32 %s62_s14, 3  ;;  %1442 = vmatpush3.bf16.msra.mxu1 %v1441_v45  ;;  %s653_s20 = scalar_lea.vmem %s1974_s2, %s1176_s15 }
  0x52   : > { %s64_s26 = scalar_lea.vmem %s1974_s2, %s1132_s16  ;;  %v654_v47 = vld [vmem:[%s653_s20] sm:$0xff]  ;;  %1443 = vmatprep.subr.bf16.mxu1 %v1566_v2  ;;  %s66_s27 = sadd.s32 145, %s1619_s25 }
  0x53   : > { %s655_s30 = sadd.s32 144, %s1623_s28  ;;  %v1489_v48 = vpack.c.bf16 %v654_v47, %v649_v46  ;;  %s67_s4 = sshra.s32 %s66_s27, 3  ;;  %v65_v49 = vld [vmem:[%s64_s26] sm:$0xff]  ;;  %v906_v46 = vsel %vm903_vm9, %v1702_v24, 0.0 }
  0x54   : > { %s656_s7 = sshra.s32 %s655_s30, 3  ;;  %s1133_s8 = sshll.u32 %s67_s4, 3 }
  0x55   : > { %s1177_s9 = sshll.u32 %s656_s7, 3  ;;  %1490 = vmatpush3.bf16.msra.mxu0 %v1489_v48  ;;  %s69_s11 = scalar_lea.vmem %s1974_s2, %s1133_s8 }
  0x56   : > { %s658_s13 = scalar_lea.vmem %s1974_s2, %s1177_s9  ;;  %1491 = vmatprep.subr.bf16.mxu0 %v1566_v2  ;;  %v70_v50 = vld [vmem:[%s69_s11] sm:$0xff]  ;;  %s660_s25 = sadd.s32 145, %s1623_s28 }
  0x57   : > { %s269_s14 = sshra.s32 %s1625_s29, 3  ;;  %v1444_v51 = vpack.c.bf16 %v70_v50, %v65_v49  ;;  %s661_s15 = sshra.s32 %s660_s25, 3  ;;  %v659_v52 = vld [vmem:[%s658_s13] sm:$0xff] }
  0x58   : > { %s1144_s16 = sshll.u32 %s269_s14, 3  ;;  %s1178_s18 = sshll.u32 %s661_s15, 3 }
  0x59   : > { %s271_s22 = scalar_lea.vmem %s1974_s2, %s1144_s16  ;;  %1445 = vmatpush3.bf16.msra.mxu1 %v1444_v51  ;;  %s663_s27 = scalar_lea.vmem %s1974_s2, %s1178_s18 }
  0x5a   : > { %s273_s28 = sadd.s32 1, %s1625_s29  ;;  %v664_v54 = vld [vmem:[%s663_s27] sm:$0xff]  ;;  %1446 = vmatprep.subr.bf16.mxu1 %v1566_v2  ;;  %s745_s4 = sshra.s32 %s1629_s5, 3 }
  0x5b   : > { %s274_s30 = sshra.s32 %s273_s28, 3  ;;  %v1492_v55 = vpack.c.bf16 %v664_v54, %v659_v52  ;;  %v272_v56 = vld [vmem:[%s271_s22] sm:$0xff]  ;;  %s1180_s8 = sshll.u32 %s745_s4, 3 }
  0x5c   : > { %s1145_s7 = sshll.u32 %s274_s30, 3  ;;  %1306 = vmatmul.mubr.msk.f32.vlgmr.msra.gmra.mrb[0].mxu1 %vm120_vm2, %v74_v53  ;;  %s747_s12 = scalar_lea.vmem %s1974_s2, %s1180_s8 }
  0x5d   : > { %s276_s10 = scalar_lea.vmem %s1974_s2, %s1145_s7  ;;  %1493 = vmatpush3.bf16.msra.mxu0 %v1492_v55  ;;  %s749_s13 = sadd.s32 1, %s1629_s5  ;;  %1324 = vmatprep.mubr.msk.f32.mxu1 %vm1567_vm0, %v1568_v3  ;;  %v748_v60 = vld [vmem:[%s747_s12] sm:$0xff] }
  0x5e   : > { %v277_v57 = vld [vmem:[%s276_s10] sm:$0xff]  ;;  %s278_s25 = sadd.s32 16, %s1625_s29  ;;  %1494 = vmatprep.subr.bf16.mxu0 %v1566_v2  ;;  %s750_s14 = sshra.s32 %s749_s13, 3 }
  0x5f   : > { %v1447_v59 = vpack.c.bf16 %v277_v57, %v272_v56  ;;  %s279_s15 = sshra.s32 %s278_s25, 3  ;;  %s1181_s16 = sshll.u32 %s750_s14, 3 }
  0x60   : > { %s1146_s18 = sshll.u32 %s279_s15, 3  ;;  %1382 = vmatmul.mubr.msk.f32.vlgmr.msra.gmra.mrb[0].mxu0 %vm120_vm2, %v668_v58  ;;  %s752_s22 = scalar_lea.vmem %s1974_s2, %s1181_s16 }
  0x61   : > { %1448 = vmatpush3.bf16.msra.mxu1 %v1447_v59  ;;  %s281_s27 = scalar_lea.vmem %s1974_s2, %s1146_s18  ;;  %v753_v61 = vld [vmem:[%s752_s22] sm:$0xff]  ;;  %s283_s28 = sadd.s32 17, %s1625_s29  ;;  %1400 = vmatprep.mubr.msk.f32.mxu0 %vm1567_vm0, %v1568_v3 }
  0x62   : > { %1449 = vmatprep.subr.bf16.mxu1 %v1566_v2  ;;  %s754_s30 = sadd.s32 16, %s1629_s5  ;;  %v1495_v62 = vpack.c.bf16 %v753_v61, %v748_v60  ;;  %s284_s4 = sshra.s32 %s283_s28, 3  ;;  %v282_v63 = vld [vmem:[%s281_s27] sm:$0xff] }
  0x63   : > { %s755_s7 = sshra.s32 %s754_s30, 3  ;;  %s1147_s8 = sshll.u32 %s284_s4, 3 }
  0x64   : > { %s1182_s9 = sshll.u32 %s755_s7, 3  ;;  %1496 = vmatpush3.bf16.msra.mxu0 %v1495_v62  ;;  %s286_s11 = scalar_lea.vmem %s1974_s2, %s1147_s8 }
  0x65   : > { %s757_s13 = scalar_lea.vmem %s1974_s2, %s1182_s9  ;;  %1497 = vmatprep.subr.bf16.mxu0 %v1566_v2  ;;  %v287_v0 = vld [vmem:[%s286_s11] sm:$0xff]  ;;  %s759_s25 = sadd.s32 17, %s1629_s5 }
  0x66   : > { %s288_s14 = sadd.s32 128, %s1625_s29  ;;  %v1450_v4 = vpack.c.bf16 %v287_v0, %v282_v63  ;;  %s760_s15 = sshra.s32 %s759_s25, 3  ;;  %v758_v5 = vld [vmem:[%s757_s13] sm:$0xff] }
  0x67   : > { %s289_s16 = sshra.s32 %s288_s14, 3  ;;  %s1183_s18 = sshll.u32 %s760_s15, 3 }
  0x68   : > { %s1148_s19 = sshll.u32 %s289_s16, 3  ;;  %1451 = vmatpush3.bf16.msra.mxu1 %v1450_v4  ;;  %s762_s23 = scalar_lea.vmem %s1974_s2, %s1183_s18 }
  0x69   : > { %s291_s28 = scalar_lea.vmem %s1974_s2, %s1148_s19  ;;  %v763_v6 = vld [vmem:[%s762_s23] sm:$0xff]  ;;  %1452 = vmatprep.subr.bf16.mxu1 %v1566_v2  ;;  %s293_s30 = sadd.s32 129, %s1625_s29 }
  0x6a   : > { %s764_s4 = sadd.s32 128, %s1629_s5  ;;  %v1498_v7 = vpack.c.bf16 %v763_v6, %v758_v5  ;;  %s294_s7 = sshra.s32 %s293_s30, 3  ;;  %v292_v8 = vld [vmem:[%s291_s28] sm:$0xff] }
  0x6b   : > { %s765_s8 = sshra.s32 %s764_s4, 3  ;;  %s1149_s9 = sshll.u32 %s294_s7, 3 }
  0x6c   : > { %s1184_s21 = sshll.u32 %s765_s8, 3  ;;  %1499 = vmatpush3.bf16.msra.mxu0 %v1498_v7  ;;  %s296_s24 = scalar_lea.vmem %s1974_s2, %s1149_s9 }
  0x6d   : > { %s767_s25 = scalar_lea.vmem %s1974_s2, %s1184_s21  ;;  %1500 = vmatprep.subr.bf16.mxu0 %v1566_v2  ;;  %v297_v9 = vld [vmem:[%s296_s24] sm:$0xff]  ;;  %s769_s14 = sadd.s32 129, %s1629_s5 }
  0x6e   : > { %s298_s15 = sadd.s32 144, %s1625_s29  ;;  %v1453_v10 = vpack.c.bf16 %v297_v9, %v292_v8  ;;  %s770_s16 = sshra.s32 %s769_s14, 3  ;;  %v768_v11 = vld [vmem:[%s767_s25] sm:$0xff] }
  0x6f   : > { %s299_s18 = sshra.s32 %s298_s15, 3  ;;  %s1185_s19 = sshll.u32 %s770_s16, 3 }
  0x70   : > { %s1150_s20 = sshll.u32 %s299_s18, 3  ;;  %1454 = vmatpush3.bf16.msra.mxu1 %v1453_v10  ;;  %s772_s26 = scalar_lea.vmem %s1974_s2, %s1185_s19 }
  0x71   : > { %s301_s30 = scalar_lea.vmem %s1974_s2, %s1150_s20  ;;  %v773_v12 = vld [vmem:[%s772_s26] sm:$0xff]  ;;  %1455 = vmatprep.subr.bf16.mxu1 %v1566_v2  ;;  %s303_s4 = sadd.s32 145, %s1625_s29 }
  0x72   : > { %s774_s7 = sadd.s32 144, %s1629_s5  ;;  %v1501_v13 = vpack.c.bf16 %v773_v12, %v768_v11  ;;  %s304_s8 = sshra.s32 %s303_s4, 3  ;;  %v302_v14 = vld [vmem:[%s301_s30] sm:$0xff] }
  0x73   : > { %s775_s9 = sshra.s32 %s774_s7, 3  ;;  %s1151_s21 = sshll.u32 %s304_s8, 3 }
  0x74   : > { %s1186_s10 = sshll.u32 %s775_s9, 3  ;;  %1502 = vmatpush3.bf16.msra.mxu0 %v1501_v13  ;;  %s306_s12 = scalar_lea.vmem %s1974_s2, %s1151_s21 }
  0x75   : > { %s777_s14 = scalar_lea.vmem %s1974_s2, %s1186_s10  ;;  %1503 = vmatprep.subr.bf16.mxu0 %v1566_v2  ;;  %v307_v15 = vld [vmem:[%s306_s12] sm:$0xff]  ;;  %s779_s29 = sadd.s32 145, %s1629_s5 }
  0x76   : > { %s388_s15 = sshra.s32 %s1631_s6, 3  ;;  %v1456_v16 = vpack.c.bf16 %v307_v15, %v302_v14  ;;  %s780_s16 = sshra.s32 %s779_s29, 3  ;;  %v778_v17 = vld [vmem:[%s777_s14] sm:$0xff] }
  0x77   : > { %s1153_s18 = sshll.u32 %s388_s15, 3  ;;  %s1187_s19 = sshll.u32 %s780_s16, 3 }
  0x78   : > { %s390_s23 = scalar_lea.vmem %s1974_s2, %s1153_s18  ;;  %1457 = vmatpush3.bf16.msra.mxu1 %v1456_v16  ;;  %s782_s28 = scalar_lea.vmem %s1974_s2, %s1187_s19 }
  0x79   : > { %s392_s5 = sadd.s32 1, %s1631_s6  ;;  %v783_v19 = vld [vmem:[%s782_s28] sm:$0xff]  ;;  %1458 = vmatprep.subr.bf16.mxu1 %v1566_v2  ;;  %s862_s4 = sadd.s32 7, %s1602_s0 }
  0x7a   : > { %s393_s30 = sshra.s32 %s392_s5, 3  ;;  %v1504_v20 = vpack.c.bf16 %v783_v19, %v778_v17  ;;  %v391_v21 = vld [vmem:[%s390_s23] sm:$0xff]  ;;  %s1884_s8 = sld [smem:[#allocation3 + %s862_s4]] }
  0x7b   : > { %s1154_s7 = sshll.u32 %s393_s30, 3  ;;  %1325 = vmatmul.mubr.msk.f32.vlgmr.msra.gmra.mrb[0].mxu1 %vm120_vm2, %v311_v18  ;;  %s397_s11 = sadd.s32 16, %s1631_s6 }
  0x7c   : > { %s395_s10 = scalar_lea.vmem %s1974_s2, %s1154_s7  ;;  %1505 = vmatpush3.bf16.msra.mxu0 %v1504_v20  ;;  %s398_s24 = sshra.s32 %s397_s11, 3  ;;  %1343 = vmatprep.mubr.msk.f32.mxu1 %vm1567_vm0, %v1568_v3 }
  0x7d   : > { %v396_v22 = vld [vmem:[%s395_s10] sm:$0xff]  ;;  %s402_s12 = sadd.s32 17, %s1631_s6  ;;  %1506 = vmatprep.subr.bf16.mxu0 %v1566_v2  ;;  %s1155_s13 = sshll.u32 %s398_s24, 3 }
  0x7e   : > { %v1459_v25 = vpack.c.bf16 %v396_v22, %v391_v21  ;;  %s403_s25 = sshra.s32 %s402_s12, 3  ;;  %s400_s15 = scalar_lea.vmem %s1974_s2, %s1155_s13 }
  0x7f   : > { %s1156_s16 = sshll.u32 %s403_s25, 3  ;;  %1401 = vmatmul.mubr.msk.f32.vlgmr.msra.gmra.mrb[0].mxu0 %vm120_vm2, %v787_v23  ;;  %v401_v26 = vld [vmem:[%s400_s15] sm:$0xff]  ;;  %s407_s22 = sadd.s32 128, %s1631_s6 }
  0x80   : > { %1460 = vmatpush3.bf16.msra.mxu1 %v1459_v25  ;;  %s405_s20 = scalar_lea.vmem %s1974_s2, %s1156_s16  ;;  %s864_s23 = sshra.s32 %s1884_s8, 3  ;;  %1419 = vmatprep.mubr.msk.f32.mxu0 %vm1567_vm0, %v1568_v3 }
  0x81   : > { %s868_s26 = sadd.s32 1, %s1884_s8  ;;  %1461 = vmatprep.subr.bf16.mxu1 %v1566_v2  ;;  %v406_v27 = vld [vmem:[%s405_s20] sm:$0xff]  ;;  %s1189_s27 = sshll.u32 %s864_s23, 3 }
  0x82   : > { %s869_s28 = sshra.s32 %s868_s26, 3  ;;  %v1462_v28 = vpack.c.bf16 %v406_v27, %v401_v26  ;;  %s866_s4 = scalar_lea.vmem %s1974_s2, %s1189_s27 }
  0x83   : > { %s1190_s7 = sshll.u32 %s869_s28, 3  ;;  %v867_v29 = vld [vmem:[%s866_s4] sm:$0xff]  ;;  %s873_s11 = sadd.s32 16, %s1884_s8 }
  0x84   : > { %s871_s10 = scalar_lea.vmem %s1974_s2, %s1190_s7  ;;  %1463 = vmatpush3.bf16.msra.mxu1 %v1462_v28  ;;  %s874_s24 = sshra.s32 %s873_s11, 3 }
  0x85   : > { %v872_v30 = vld [vmem:[%s871_s10] sm:$0xff]  ;;  %s878_s12 = sadd.s32 17, %s1884_s8  ;;  %1464 = vmatprep.subr.bf16.mxu1 %v1566_v2  ;;  %s1191_s13 = sshll.u32 %s874_s24, 3 }
  0x86   : > { %v1507_v3 = vpack.c.bf16 %v872_v30, %v867_v29  ;;  %s879_s25 = sshra.s32 %s878_s12, 3  ;;  %s876_s15 = scalar_lea.vmem %s1974_s2, %s1191_s13 }
  0x87   : > { %s1192_s16 = sshll.u32 %s879_s25, 3  ;;  %v877_v31 = vld [vmem:[%s876_s15] sm:$0xff]  ;;  %s408_s23 = sshra.s32 %s407_s22, 3 }
  0x88   : > { %1508 = vmatpush3.bf16.msra.mxu0 %v1507_v3  ;;  %s881_s20 = scalar_lea.vmem %s1974_s2, %s1192_s16  ;;  %s1157_s26 = sshll.u32 %s408_s23, 3 }
  0x89   : > { %1509 = vmatprep.subr.bf16.mxu0 %v1566_v2  ;;  %v882_v32 = vld [vmem:[%s881_s20] sm:$0xff]  ;;  %s412_s27 = sadd.s32 129, %s1631_s6  ;;  %s410_s30 = scalar_lea.vmem %s1974_s2, %s1157_s26 }
  0x8a   : > { %v1510_v33 = vpack.c.bf16 %v882_v32, %v877_v31  ;;  %s413_s4 = sshra.s32 %s412_s27, 3  ;;  %v411_v34 = vld [vmem:[%s410_s30] sm:$0xff]  ;;  %s883_s9 = sadd.s32 128, %s1884_s8 }
  0x8b   : > { %s1158_s7 = sshll.u32 %s413_s4, 3  ;;  %s884_s11 = sshra.s32 %s883_s9, 3 }
  0x8c   : > { %1511 = vmatpush3.bf16.msra.mxu0 %v1510_v33  ;;  %s415_s22 = scalar_lea.vmem %s1974_s2, %s1158_s7  ;;  %s1193_s24 = sshll.u32 %s884_s11, 3 }
  0x8d   : > { %1512 = vmatprep.subr.bf16.mxu0 %v1566_v2  ;;  %v416_v35 = vld [vmem:[%s415_s22] sm:$0xff]  ;;  %s888_s12 = sadd.s32 129, %s1884_s8  ;;  %s886_s14 = scalar_lea.vmem %s1974_s2, %s1193_s24 }
  0x8e   : > { %v1465_v36 = vpack.c.bf16 %v416_v35, %v411_v34  ;;  %s889_s29 = sshra.s32 %s888_s12, 3  ;;  %v887_v37 = vld [vmem:[%s886_s14] sm:$0xff]  ;;  %s417_s16 = sadd.s32 144, %s1631_s6 }
  0x8f   : > { %s1194_s15 = sshll.u32 %s889_s29, 3  ;;  %s418_s23 = sshra.s32 %s417_s16, 3 }
  0x90   : > { %1466 = vmatpush3.bf16.msra.mxu1 %v1465_v36  ;;  %s891_s20 = scalar_lea.vmem %s1974_s2, %s1194_s15  ;;  %s1159_s26 = sshll.u32 %s418_s23, 3 }
  0x91   : > { %v892_v38 = vld [vmem:[%s891_s20] sm:$0xff]  ;;  %1467 = vmatprep.subr.bf16.mxu1 %v1566_v2  ;;  %s422_s27 = sadd.s32 145, %s1631_s6  ;;  %s420_s30 = scalar_lea.vmem %s1974_s2, %s1159_s26 }
  0x92   : > { %v1513_v39 = vpack.c.bf16 %v892_v38, %v887_v37  ;;  %s423_s4 = sshra.s32 %s422_s27, 3  ;;  %v421_v40 = vld [vmem:[%s420_s30] sm:$0xff]  ;;  %s893_s9 = sadd.s32 144, %s1884_s8 }
  0x93   : > { %s1160_s7 = sshll.u32 %s423_s4, 3  ;;  %s894_s11 = sshra.s32 %s893_s9, 3 }
  0x94   : > { %1514 = vmatpush3.bf16.msra.mxu0 %v1513_v39  ;;  %s425_s22 = scalar_lea.vmem %s1974_s2, %s1160_s7  ;;  %s1195_s24 = sshll.u32 %s894_s11, 3 }
  0x95   : > { %1515 = vmatprep.subr.bf16.mxu0 %v1566_v2  ;;  %v426_v41 = vld [vmem:[%s425_s22] sm:$0xff]  ;;  %s898_s6 = sadd.s32 145, %s1884_s8  ;;  %s896_s25 = scalar_lea.vmem %s1974_s2, %s1195_s24  ;;  %v430_v2 = vsel %vm427_vm8, %v1702_v24, 0.0 }
  0x96   : > { %v1468_v42 = vpack.c.bf16 %v426_v41, %v421_v40  ;;  %s899_s14 = sshra.s32 %s898_s6, 3  ;;  %v897_v43 = vld [vmem:[%s896_s25] sm:$0xff]  ;;  %s981_s20 = scalar_lea.vmem %s1975_s3, %s1602_s0 }
  0x97   : > { %s1196_s29 = sshll.u32 %s899_s14, 3 }
  0x98   : > { %1469 = vmatpush3.bf16.msra.mxu1 %v1468_v42  ;;  %s901_s18 = scalar_lea.vmem %s1974_s2, %s1196_s29 }
  0x99   : > { %v902_v44 = vld [vmem:[%s901_s18] sm:$0xff] }
  0x9a   : > { %v1516_v45 = vpack.c.bf16 %v902_v44, %v897_v43 }
  0x9b   : > { %1344 = vmatmul.mubr.msk.f32.vlgmr.msra.gmra.mrb[0].mxu1 %vm120_vm2, %v430_v2 }
  0x9c   : > { %1517 = vmatpush3.bf16.msra.mxu0 %v1516_v45 }
  0x9f   : > { %1420 = vmatmul.mubr.msk.f32.vlgmr.msra.gmra.mrb[0].mxu0 %vm120_vm2, %v906_v46 }
 0x16e   : > { %v500_v47 = vpop.f32.mrb[0].mxu1 }
 0x16f   : > { %v1345_v48 = vpop.f32.mrb[1].mxu1  ;;  %25 = sbr.rel (!%p23_p5) target bundleno = 18 (0x12), region = 101 }
 0x172   : > { %v976_v49 = vpop.f32.mrb[0].mxu0 }
 0x173   : > { %v1518_v50 = vadd.f32 %v976_v49, %v500_v47  ;;  %v1421_v51 = vpop.f32.mrb[1].mxu0 }
 0x175   : > { %983 = vst.msk [vmem:[%s981_s20] sm:$0xff] %vm982_vm10, %v1518_v50 }

</bundles_post_ra>
